<compile_context>
chip_gen: v6e
topology: v6e:2x2x1
jax: 0.10.0
libtpu: 0.0.40
codegen_flags: <defaults>
</compile_context>

<pallas_src>
import functools

import jax
import jax.numpy as jnp
from jax.experimental import pallas as pl
from jax.experimental.pallas import tpu as pltpu


# ---------------------------------------------------------------------------
# Fused forward kernel.  Grid = (num_GNN_layers, num_self_att_layers).
# Each grid step runs ONE transformer-encoder sub-layer; on the last
# sub-layer of a GNN layer it also runs GraphConvolution + folded-BN + relu,
# sum-pool, the prediction linear and the score accumulation.
# ---------------------------------------------------------------------------
def _ugformer_kernel(
    adj_ref, feat_ref,
    w_in_ref, b_in_ref, w_out_ref, b_out_ref,
    ln1_g_ref, ln1_b_ref,
    w1_ref, b1_ref, w2_ref, b2_ref,
    ln2_g_ref, ln2_b_ref,
    gw_ref, bn_scale_ref, bn_shift_ref,
    pw_ref, pb_ref,
    scores_ref,            # output: (1, CPAD) f32, VMEM-resident accumulator
    x_vmem,                # scratch: (N, F) f32 node-feature carry
    *, nhead, eps,
):
    l = pl.program_id(0)
    s = pl.program_id(1)
    n, f = feat_ref.shape
    dh = f // nhead
    scale = 1.0 / (dh ** 0.5)

    @pl.when(jnp.logical_and(l == 0, s == 0))
    def _():
        x_vmem[...] = feat_ref[...]
        scores_ref[...] = jnp.zeros_like(scores_ref)

    def layernorm(y, g, b):
        mu = jnp.mean(y, axis=-1, keepdims=True)
        var = jnp.mean((y - mu) ** 2, axis=-1, keepdims=True)
        return (y - mu) * jax.lax.rsqrt(var + eps) * g + b

    x = x_vmem[...]                                          # (N, F) f32

    # ---- one TransformerEncoder sub-layer (post-LN, eval mode) ----
    xb = x.astype(jnp.bfloat16)
    qkv = (jnp.dot(xb, w_in_ref[...], preferred_element_type=jnp.float32)
           + b_in_ref[...])                                  # (N, 3F) f32
    qkv_b = qkv.astype(jnp.bfloat16)                         # cast once

    w_out = w_out_ref[...]                                   # (F, F) bf16
    attn = jnp.zeros((n, f), jnp.float32)
    for h in range(nhead):                                   # static head loop
        q = qkv_b[:, h * dh:(h + 1) * dh]
        k = qkv_b[:, f + h * dh: f + (h + 1) * dh]
        v = qkv_b[:, 2 * f + h * dh: 2 * f + (h + 1) * dh]
        # q @ k^T on the MXU (contract last dims; no explicit transpose)
        scr = jax.lax.dot_general(
            q, k, (((1,), (1,)), ((), ())),
            preferred_element_type=jnp.float32) * scale      # (N, N) f32
        m = jnp.max(scr, axis=-1, keepdims=True)
        p = jnp.exp(scr - m)
        denom = jnp.sum(p, axis=-1, keepdims=True)
        p = p * pl.reciprocal(denom, approx=True)            # EUP reciprocal
        ho = jnp.dot(p.astype(jnp.bfloat16), v,
                     preferred_element_type=jnp.float32)     # (N, dh) f32
        # Fused output projection: accumulate directly into (N, F) -- no
        # lane-dim concat of per-head blocks.
        attn = attn + jnp.dot(ho.astype(jnp.bfloat16),
                              w_out[h * dh:(h + 1) * dh, :],
                              preferred_element_type=jnp.float32)
    attn = attn + b_out_ref[...]

    x = layernorm(x + attn, ln1_g_ref[...], ln1_b_ref[...])  # post-LN #1

    h1 = (jnp.dot(x.astype(jnp.bfloat16), w1_ref[...],
                  preferred_element_type=jnp.float32) + b1_ref[...])
    h1 = jnp.maximum(h1, 0.0)
    ffo = (jnp.dot(h1.astype(jnp.bfloat16), w2_ref[...],
                   preferred_element_type=jnp.float32) + b2_ref[...])

    x = layernorm(x + ffo, ln2_g_ref[...], ln2_b_ref[...])   # post-LN #2
    x_vmem[...] = x

    # ---- last self-attention sub-layer of this GNN layer: GCN + pool + pred
    @pl.when(s == pl.num_programs(1) - 1)
    def _():
        support = jnp.dot(x.astype(jnp.bfloat16), gw_ref[...],
                          preferred_element_type=jnp.float32)
        out = jnp.dot(adj_ref[...], support.astype(jnp.bfloat16),
                      preferred_element_type=jnp.float32)
        out = jnp.maximum(out * bn_scale_ref[...] + bn_shift_ref[...], 0.0)
        x_vmem[...] = out                                    # carry to next layer

        ge = jnp.sum(out, axis=0, keepdims=True)             # (1, F) sublane reduce
        sc = (jnp.dot(ge.astype(jnp.bfloat16), pw_ref[...],
                      preferred_element_type=jnp.float32) + pb_ref[...])
        scores_ref[...] = scores_ref[...] + sc               # running score


# ---------------------------------------------------------------------------
# BlockSpec helpers: weights are streamed one (layer, sub-layer) slice at a
# time; leading layer axes are squeezed out of the kernel view.
# ---------------------------------------------------------------------------
def _full(shape):
    return pl.BlockSpec(shape, lambda l, s: (0,) * len(shape))


def _per_ls(shape):
    return pl.BlockSpec((None, None) + shape,
                        lambda l, s: (l, s) + (0,) * len(shape))


def _per_l(shape):
    return pl.BlockSpec((None,) + shape,
                        lambda l, s: (l,) + (0,) * len(shape))


# ---------------------------------------------------------------------------
# Forward: one fused pallas_call for the whole model.
# ---------------------------------------------------------------------------
def forward(adj, node_features, params, *, nhead, num_classes, eps=1e-5):
    enc, gcn, pred = params["enc"], params["gcn"], params["pred"]
    n, f = node_features.shape
    num_layers, num_att = enc["w_in"].shape[:2]
    ff = enc["w1"].shape[-1]
    cpad = pred["w"].shape[-1]
    dh = f // nhead

    adj_b = adj.astype(jnp.bfloat16)      # exact for a 0/1 adjacency matrix

    inputs = (
        adj_b, node_features,
        enc["w_in"], enc["b_in"], enc["w_out"], enc["b_out"],
        enc["ln1_g"], enc["ln1_b"],
        enc["w1"], enc["b1"], enc["w2"], enc["b2"],
        enc["ln2_g"], enc["ln2_b"],
        gcn["w"], gcn["scale"], gcn["shift"],
        pred["w"], pred["b"],
    )
    in_specs = [
        _full((n, n)),                      # adj
        _full((n, f)),                      # node_features
        _per_ls((f, 3 * f)), _per_ls((1, 3 * f)),   # w_in, b_in
        _per_ls((f, f)),     _per_ls((1, f)),       # w_out, b_out
        _per_ls((1, f)),     _per_ls((1, f)),       # ln1 gamma, beta
        _per_ls((f, ff)),    _per_ls((1, ff)),      # w1, b1
        _per_ls((ff, f)),    _per_ls((1, f)),       # w2, b2
        _per_ls((1, f)),     _per_ls((1, f)),       # ln2 gamma, beta
        _per_l((f, f)), _per_l((1, f)), _per_l((1, f)),   # gcn W, bn scale/shift
        _per_l((f, cpad)), _per_l((1, cpad)),       # prediction W, b (padded)
    ]
    out_specs = pl.BlockSpec((1, cpad), lambda l, s: (0, 0))

    # Advisory cost estimate so XLA schedules the call sensibly.
    flops_sub = (2 * n * f * 3 * f
                 + nhead * (2 * 2 * n * n * dh + 2 * n * dh * f)
                 + 2 * n * f * ff + 2 * n * ff * f)
    flops_gnn = 2 * n * f * f + 2 * n * n * f + 2 * f * cpad
    flops = num_layers * (num_att * flops_sub + flops_gnn)
    transcendentals = num_layers * num_att * (nhead * n * n + 4 * n)
    bytes_accessed = sum(int(a.size) * a.dtype.itemsize for a in inputs) + 4 * cpad

    kernel = functools.partial(_ugformer_kernel, nhead=nhead, eps=eps)
    scores = pl.pallas_call(
        kernel,
        out_shape=jax.ShapeDtypeStruct((1, cpad), jnp.float32),
        grid_spec=pltpu.PrefetchScalarGridSpec(
            num_scalar_prefetch=0,
            grid=(num_layers, num_att),
            in_specs=in_specs,
            out_specs=out_specs,
            scratch_shapes=[pltpu.VMEM((n, f), jnp.float32)],
        ),
        compiler_params=pltpu.CompilerParams(
            dimension_semantics=("arbitrary", "arbitrary"),
            vmem_limit_bytes=32 * 1024 * 1024,
        ),
        cost_estimate=pl.CostEstimate(
            flops=int(flops),
            transcendentals=int(transcendentals),
            bytes_accessed=int(bytes_accessed),
        ),
    )(*inputs)
    return scores[0, :num_classes]                           # (num_classes,)


# ---------------------------------------------------------------------------
# Parameter construction: per-layer weights stacked along leading layer axes,
# matmul weights pre-cast to bf16, BatchNorm folded for eval mode, prediction
# head padded to a lane-dense class dim.
# ---------------------------------------------------------------------------
def init_params(key, f, ff, c, cpad, n_gnn, n_att):
    def u(k, shape, s):
        return jax.random.uniform(k, shape, jnp.float32, -s, s)

    ks = jax.random.split(key, 11)
    enc = {
        "w_in":  u(ks[0], (n_gnn, n_att, f, 3 * f), 0.1).astype(jnp.bfloat16),
        "b_in":  u(ks[1], (n_gnn, n_att, 1, 3 * f), 0.1),
        "w_out": u(ks[2], (n_gnn, n_att, f, f), 0.1).astype(jnp.bfloat16),
        "b_out": u(ks[3], (n_gnn, n_att, 1, f), 0.1),
        "ln1_g": jnp.ones((n_gnn, n_att, 1, f), jnp.float32),
        "ln1_b": jnp.zeros((n_gnn, n_att, 1, f), jnp.float32),
        "w1":    u(ks[4], (n_gnn, n_att, f, ff), 0.1).astype(jnp.bfloat16),
        "b1":    u(ks[5], (n_gnn, n_att, 1, ff), 0.1),
        "w2":    u(ks[6], (n_gnn, n_att, ff, f), 0.1).astype(jnp.bfloat16),
        "b2":    u(ks[7], (n_gnn, n_att, 1, f), 0.1),
        "ln2_g": jnp.ones((n_gnn, n_att, 1, f), jnp.float32),
        "ln2_b": jnp.zeros((n_gnn, n_att, 1, f), jnp.float32),
    }

    # GCN weight + folded eval-mode BatchNorm (running stats).
    stdv = 1.0 / (f ** 0.5)
    bn_g = jnp.ones((n_gnn, 1, f), jnp.float32)
    bn_b = jnp.zeros((n_gnn, 1, f), jnp.float32)
    bn_rm = jnp.zeros((n_gnn, 1, f), jnp.float32)
    bn_rv = jnp.ones((n_gnn, 1, f), jnp.float32)
    bn_scale = bn_g / jnp.sqrt(bn_rv + 1e-5)
    bn_shift = bn_b - bn_rm * bn_scale
    gcn = {
        "w": u(ks[8], (n_gnn, f, f), stdv).astype(jnp.bfloat16),
        "scale": bn_scale,
        "shift": bn_shift,
    }

    # Prediction head, zero-padded to cpad output lanes.
    pw = jnp.zeros((n_gnn, f, cpad), jnp.float32)
    pw = pw.at[:, :, :c].set(u(ks[9], (n_gnn, f, c), 0.1))
    pb = jnp.zeros((n_gnn, 1, cpad), jnp.float32)
    pb = pb.at[:, :, :c].set(u(ks[10], (n_gnn, 1, c), 0.1))
    pred = {"w": pw.astype(jnp.bfloat16), "b": pb}

    return {"enc": enc, "gcn": gcn, "pred": pred}


if __name__ == "__main__":
    # Small config consistent with the module: N nodes, feature_dim_size=32,
    # ff_hidden_size=64, num_classes=5, num_self_att_layers=1,
    # num_GNN_layers=2, nhead=4.
    N, F_DIM, FF, C = 8, 32, 64, 5
    CPAD = 128                       # lane-dense padded class dim for scores
    NUM_GNN_LAYERS, NUM_SELF_ATT_LAYERS, NHEAD = 2, 1, 4

    key = jax.random.PRNGKey(0)
    kx, ka, kp = jax.random.split(key, 3)
    node_features = jax.random.normal(kx, (N, F_DIM), jnp.float32)
    adj = (jax.random.uniform(ka, (N, N)) < 0.4).astype(jnp.float32)
    adj = jnp.clip(adj + adj.T + jnp.eye(N, dtype=jnp.float32), 0.0, 1.0)

    params = init_params(kp, F_DIM, FF, C, CPAD,
                         NUM_GNN_LAYERS, NUM_SELF_ATT_LAYERS)

    out = forward(adj, node_features, params, nhead=NHEAD, num_classes=C)
    jax.block_until_ready(out)
    assert out.shape == (C,)
    print("KERNEL_OK")
</pallas_src>

<mosaic_0001>
module attributes {stable_mosaic.version = 11 : i64} {
  func.func @_ugformer_kernel(%arg0: i32, %arg1: i32, %arg2: memref<8x8xbf16, #tpu.memory_space<vmem>>, %arg3: memref<8x32xf32, #tpu.memory_space<vmem>>, %arg4: memref<1x1x32x96xbf16, #tpu.memory_space<vmem>>, %arg5: memref<1x1x1x96xf32, #tpu.memory_space<vmem>>, %arg6: memref<1x1x32x32xbf16, #tpu.memory_space<vmem>>, %arg7: memref<1x1x1x32xf32, #tpu.memory_space<vmem>>, %arg8: memref<1x1x1x32xf32, #tpu.memory_space<vmem>>, %arg9: memref<1x1x1x32xf32, #tpu.memory_space<vmem>>, %arg10: memref<1x1x32x64xbf16, #tpu.memory_space<vmem>>, %arg11: memref<1x1x1x64xf32, #tpu.memory_space<vmem>>, %arg12: memref<1x1x64x32xbf16, #tpu.memory_space<vmem>>, %arg13: memref<1x1x1x32xf32, #tpu.memory_space<vmem>>, %arg14: memref<1x1x1x32xf32, #tpu.memory_space<vmem>>, %arg15: memref<1x1x1x32xf32, #tpu.memory_space<vmem>>, %arg16: memref<1x32x32xbf16, #tpu.memory_space<vmem>>, %arg17: memref<1x1x32xf32, #tpu.memory_space<vmem>>, %arg18: memref<1x1x32xf32, #tpu.memory_space<vmem>>, %arg19: memref<1x32x128xbf16, #tpu.memory_space<vmem>>, %arg20: memref<1x1x128xf32, #tpu.memory_space<vmem>>, %arg21: memref<1x128xf32, #tpu.memory_space<vmem>>, %arg22: memref<8x32xf32, #tpu.memory_space<vmem>>) attributes {dimension_semantics = [#tpu.dimension_semantics<arbitrary>, #tpu.dimension_semantics<arbitrary>], iteration_bounds = array<i64: 2, 1>, scalar_prefetch = 0 : i64, scratch_operands = 1 : i64, tpu.core_type = #tpu.core_type<tc>, window_params = [{pipeline_mode = #tpu.pipeline_mode<synchronous>, transform_indices = @transform_0, window_bounds = array<i64: 8, 8>}, {pipeline_mode = #tpu.pipeline_mode<synchronous>, transform_indices = @transform_1, window_bounds = array<i64: 8, 32>}, {transform_indices = @transform_2, window_bounds = array<i64: 1, 1, 32, 96>}, {transform_indices = @transform_3, window_bounds = array<i64: 1, 1, 1, 96>}, {transform_indices = @transform_4, window_bounds = array<i64: 1, 1, 32, 32>}, {transform_indices = @transform_5, window_bounds = array<i64: 1, 1, 1, 32>}, {transform_indices = @transform_6, window_bounds = array<i64: 1, 1, 1, 32>}, {transform_indices = @transform_7, window_bounds = array<i64: 1, 1, 1, 32>}, {transform_indices = @transform_8, window_bounds = array<i64: 1, 1, 32, 64>}, {transform_indices = @transform_9, window_bounds = array<i64: 1, 1, 1, 64>}, {transform_indices = @transform_10, window_bounds = array<i64: 1, 1, 64, 32>}, {transform_indices = @transform_11, window_bounds = array<i64: 1, 1, 1, 32>}, {transform_indices = @transform_12, window_bounds = array<i64: 1, 1, 1, 32>}, {transform_indices = @transform_13, window_bounds = array<i64: 1, 1, 1, 32>}, {transform_indices = @transform_14, window_bounds = array<i64: 1, 32, 32>}, {transform_indices = @transform_15, window_bounds = array<i64: 1, 1, 32>}, {transform_indices = @transform_16, window_bounds = array<i64: 1, 1, 32>}, {transform_indices = @transform_17, window_bounds = array<i64: 1, 32, 128>}, {transform_indices = @transform_18, window_bounds = array<i64: 1, 1, 128>}, {pipeline_mode = #tpu.pipeline_mode<synchronous>, transform_indices = @transform_19, window_bounds = array<i64: 1, 128>}]} {
    %c0_i32 = arith.constant 0 : i32
    %0 = arith.cmpi eq, %arg0, %c0_i32 : i32
    %c0_i32_0 = arith.constant 0 : i32
    %1 = arith.cmpi eq, %arg1, %c0_i32_0 : i32
    %2 = arith.andi %0, %1 : i1
    %3 = arith.extui %2 : i1 to i32
    %c0_i32_1 = arith.constant 0 : i32
    %4 = arith.cmpi ne, %3, %c0_i32_1 : i32
    scf.if %4 {
      %c0_93 = arith.constant 0 : index
      %c0_94 = arith.constant 0 : index
      %186 = vector.load %arg3[%c0_93, %c0_94] : memref<8x32xf32, #tpu.memory_space<vmem>>, vector<8x32xf32>
      %c0_95 = arith.constant 0 : index
      %c0_96 = arith.constant 0 : index
      %187 = vector.load %arg22[%c0_95, %c0_96] : memref<8x32xf32, #tpu.memory_space<vmem>>, vector<8x32xf32>
      tpu.vector_store %arg22[%c0_95, %c0_96], %186 {strides = array<i32>} : memref<8x32xf32, #tpu.memory_space<vmem>>, vector<8x32xf32>,
      %cst_97 = arith.constant 0.000000e+00 : f32
      %188 = vector.broadcast %cst_97 : f32 to vector<1x128xf32>
      %c0_98 = arith.constant 0 : index
      %c0_99 = arith.constant 0 : index
      %189 = vector.load %arg21[%c0_98, %c0_99] : memref<1x128xf32, #tpu.memory_space<vmem>>, vector<1x128xf32>
      tpu.vector_store %arg21[%c0_98, %c0_99], %188 {strides = array<i32>} : memref<1x128xf32, #tpu.memory_space<vmem>>, vector<1x128xf32>,
    } else {
    }
    %c0 = arith.constant 0 : index
    %c0_2 = arith.constant 0 : index
    %5 = vector.load %arg22[%c0, %c0_2] : memref<8x32xf32, #tpu.memory_space<vmem>>, vector<8x32xf32>
    %6 = arith.truncf %5 : vector<8x32xf32> to vector<8x32xbf16>
    %c0_3 = arith.constant 0 : index
    %c0_4 = arith.constant 0 : index
    %c0_5 = arith.constant 0 : index
    %c0_6 = arith.constant 0 : index
    %7 = vector.load %arg4[%c0_3, %c0_4, %c0_5, %c0_6] : memref<1x1x32x96xbf16, #tpu.memory_space<vmem>>, vector<1x1x32x96xbf16>
    %8 = vector.shape_cast %7 : vector<1x1x32x96xbf16> to vector<32x96xbf16>
    %cst = arith.constant dense<0.000000e+00> : vector<8x96xf32>
    %9 = tpu.matmul %6, %8, %cst {dimension_numbers = #tpu.dot_dimension_numbers<[1], [0], [0], [1], [0, 0, 1, 1], [], []>} : vector<8x32xbf16>, vector<32x96xbf16>, vector<8x96xf32> -> vector<8x96xf32>
    %c0_7 = arith.constant 0 : index
    %c0_8 = arith.constant 0 : index
    %c0_9 = arith.constant 0 : index
    %c0_10 = arith.constant 0 : index
    %10 = vector.load %arg5[%c0_7, %c0_8, %c0_9, %c0_10] : memref<1x1x1x96xf32, #tpu.memory_space<vmem>>, vector<1x1x1x96xf32>
    %11 = vector.shape_cast %10 : vector<1x1x1x96xf32> to vector<1x96xf32>
    %12 = vector.broadcast %11 : vector<1x96xf32> to vector<8x96xf32>
    %13 = arith.addf %9, %12 : vector<8x96xf32>
    %14 = arith.truncf %13 : vector<8x96xf32> to vector<8x96xbf16>
    %c0_11 = arith.constant 0 : index
    %c0_12 = arith.constant 0 : index
    %c0_13 = arith.constant 0 : index
    %c0_14 = arith.constant 0 : index
    %15 = vector.load %arg6[%c0_11, %c0_12, %c0_13, %c0_14] : memref<1x1x32x32xbf16, #tpu.memory_space<vmem>>, vector<1x1x32x32xbf16>
    %16 = vector.shape_cast %15 : vector<1x1x32x32xbf16> to vector<32x32xbf16>
    %cst_15 = arith.constant 0.000000e+00 : f32
    %17 = vector.broadcast %cst_15 : f32 to vector<8x32xf32>
    %18 = vector.extract_strided_slice %14 {offsets = [0, 0], sizes = [8, 8], strides = [1, 1]} : vector<8x96xbf16> to vector<8x8xbf16>
    %19 = vector.extract_strided_slice %14 {offsets = [0, 32], sizes = [8, 8], strides = [1, 1]} : vector<8x96xbf16> to vector<8x8xbf16>
    %20 = vector.extract_strided_slice %14 {offsets = [0, 64], sizes = [8, 8], strides = [1, 1]} : vector<8x96xbf16> to vector<8x8xbf16>
    %cst_16 = arith.constant dense<0.000000e+00> : vector<8x8xf32>
    %21 = tpu.matmul %18, %19, %cst_16 {dimension_numbers = #tpu.dot_dimension_numbers<[1], [1], [0], [0], [0, 0, 1, 0], [], []>} : vector<8x8xbf16>, vector<8x8xbf16>, vector<8x8xf32> -> vector<8x8xf32>
    %cst_17 = arith.constant 0.353553385 : f32
    %22 = vector.broadcast %cst_17 : f32 to vector<8x8xf32>
    %23 = arith.mulf %21, %22 : vector<8x8xf32>
    %cst_18 = arith.constant dense<0xFF800000> : vector<8xf32>
    %24 = vector.multi_reduction <maximumf>, %23, %cst_18 [1] : vector<8x8xf32> to vector<8xf32>
    %25 = vector.shape_cast %24 : vector<8xf32> to vector<8x1xf32>
    %26 = vector.broadcast %25 : vector<8x1xf32> to vector<8x8xf32>
    %27 = arith.subf %23, %26 : vector<8x8xf32>
    %28 = math.exp %27 : vector<8x8xf32>
    %cst_19 = arith.constant dense<0.000000e+00> : vector<8xf32>
    %29 = vector.multi_reduction <add>, %28, %cst_19 [1] : vector<8x8xf32> to vector<8xf32>
    %30 = vector.shape_cast %29 : vector<8xf32> to vector<8x1xf32>
    %31 = tpu.reciprocal %30 {approx = true} : vector<8x1xf32> -> vector<8x1xf32>
    %32 = vector.broadcast %31 : vector<8x1xf32> to vector<8x8xf32>
    %33 = arith.mulf %28, %32 : vector<8x8xf32>
    %34 = arith.truncf %33 : vector<8x8xf32> to vector<8x8xbf16>
    %cst_20 = arith.constant dense<0.000000e+00> : vector<8x8xf32>
    %35 = tpu.matmul %34, %20, %cst_20 {dimension_numbers = #tpu.dot_dimension_numbers<[1], [0], [0], [1], [0, 0, 1, 1], [], []>} : vector<8x8xbf16>, vector<8x8xbf16>, vector<8x8xf32> -> vector<8x8xf32>
    %36 = arith.truncf %35 : vector<8x8xf32> to vector<8x8xbf16>
    %37 = vector.extract_strided_slice %16 {offsets = [0, 0], sizes = [8, 32], strides = [1, 1]} : vector<32x32xbf16> to vector<8x32xbf16>
    %cst_21 = arith.constant dense<0.000000e+00> : vector<8x32xf32>
    %38 = tpu.matmul %36, %37, %cst_21 {dimension_numbers = #tpu.dot_dimension_numbers<[1], [0], [0], [1], [0, 0, 1, 1], [], []>} : vector<8x8xbf16>, vector<8x32xbf16>, vector<8x32xf32> -> vector<8x32xf32>
    %39 = arith.addf %17, %38 : vector<8x32xf32>
    %40 = vector.extract_strided_slice %14 {offsets = [0, 8], sizes = [8, 8], strides = [1, 1]} : vector<8x96xbf16> to vector<8x8xbf16>
    %41 = vector.extract_strided_slice %14 {offsets = [0, 40], sizes = [8, 8], strides = [1, 1]} : vector<8x96xbf16> to vector<8x8xbf16>
    %42 = vector.extract_strided_slice %14 {offsets = [0, 72], sizes = [8, 8], strides = [1, 1]} : vector<8x96xbf16> to vector<8x8xbf16>
    %cst_22 = arith.constant dense<0.000000e+00> : vector<8x8xf32>
    %43 = tpu.matmul %40, %41, %cst_22 {dimension_numbers = #tpu.dot_dimension_numbers<[1], [1], [0], [0], [0, 0, 1, 0], [], []>} : vector<8x8xbf16>, vector<8x8xbf16>, vector<8x8xf32> -> vector<8x8xf32>
    %cst_23 = arith.constant 0.353553385 : f32
    %44 = vector.broadcast %cst_23 : f32 to vector<8x8xf32>
    %45 = arith.mulf %43, %44 : vector<8x8xf32>
    %cst_24 = arith.constant dense<0xFF800000> : vector<8xf32>
    %46 = vector.multi_reduction <maximumf>, %45, %cst_24 [1] : vector<8x8xf32> to vector<8xf32>
    %47 = vector.shape_cast %46 : vector<8xf32> to vector<8x1xf32>
    %48 = vector.broadcast %47 : vector<8x1xf32> to vector<8x8xf32>
    %49 = arith.subf %45, %48 : vector<8x8xf32>
    %50 = math.exp %49 : vector<8x8xf32>
    %cst_25 = arith.constant dense<0.000000e+00> : vector<8xf32>
    %51 = vector.multi_reduction <add>, %50, %cst_25 [1] : vector<8x8xf32> to vector<8xf32>
    %52 = vector.shape_cast %51 : vector<8xf32> to vector<8x1xf32>
    %53 = tpu.reciprocal %52 {approx = true} : vector<8x1xf32> -> vector<8x1xf32>
    %54 = vector.broadcast %53 : vector<8x1xf32> to vector<8x8xf32>
    %55 = arith.mulf %50, %54 : vector<8x8xf32>
    %56 = arith.truncf %55 : vector<8x8xf32> to vector<8x8xbf16>
    %cst_26 = arith.constant dense<0.000000e+00> : vector<8x8xf32>
    %57 = tpu.matmul %56, %42, %cst_26 {dimension_numbers = #tpu.dot_dimension_numbers<[1], [0], [0], [1], [0, 0, 1, 1], [], []>} : vector<8x8xbf16>, vector<8x8xbf16>, vector<8x8xf32> -> vector<8x8xf32>
    %58 = arith.truncf %57 : vector<8x8xf32> to vector<8x8xbf16>
    %59 = vector.extract_strided_slice %16 {offsets = [8, 0], sizes = [8, 32], strides = [1, 1]} : vector<32x32xbf16> to vector<8x32xbf16>
    %cst_27 = arith.constant dense<0.000000e+00> : vector<8x32xf32>
    %60 = tpu.matmul %58, %59, %cst_27 {dimension_numbers = #tpu.dot_dimension_numbers<[1], [0], [0], [1], [0, 0, 1, 1], [], []>} : vector<8x8xbf16>, vector<8x32xbf16>, vector<8x32xf32> -> vector<8x32xf32>
    %61 = arith.addf %39, %60 : vector<8x32xf32>
    %62 = vector.extract_strided_slice %14 {offsets = [0, 16], sizes = [8, 8], strides = [1, 1]} : vector<8x96xbf16> to vector<8x8xbf16>
    %63 = vector.extract_strided_slice %14 {offsets = [0, 48], sizes = [8, 8], strides = [1, 1]} : vector<8x96xbf16> to vector<8x8xbf16>
    %64 = vector.extract_strided_slice %14 {offsets = [0, 80], sizes = [8, 8], strides = [1, 1]} : vector<8x96xbf16> to vector<8x8xbf16>
    %cst_28 = arith.constant dense<0.000000e+00> : vector<8x8xf32>
    %65 = tpu.matmul %62, %63, %cst_28 {dimension_numbers = #tpu.dot_dimension_numbers<[1], [1], [0], [0], [0, 0, 1, 0], [], []>} : vector<8x8xbf16>, vector<8x8xbf16>, vector<8x8xf32> -> vector<8x8xf32>
    %cst_29 = arith.constant 0.353553385 : f32
    %66 = vector.broadcast %cst_29 : f32 to vector<8x8xf32>
    %67 = arith.mulf %65, %66 : vector<8x8xf32>
    %cst_30 = arith.constant dense<0xFF800000> : vector<8xf32>
    %68 = vector.multi_reduction <maximumf>, %67, %cst_30 [1] : vector<8x8xf32> to vector<8xf32>
    %69 = vector.shape_cast %68 : vector<8xf32> to vector<8x1xf32>
    %70 = vector.broadcast %69 : vector<8x1xf32> to vector<8x8xf32>
    %71 = arith.subf %67, %70 : vector<8x8xf32>
    %72 = math.exp %71 : vector<8x8xf32>
    %cst_31 = arith.constant dense<0.000000e+00> : vector<8xf32>
    %73 = vector.multi_reduction <add>, %72, %cst_31 [1] : vector<8x8xf32> to vector<8xf32>
    %74 = vector.shape_cast %73 : vector<8xf32> to vector<8x1xf32>
    %75 = tpu.reciprocal %74 {approx = true} : vector<8x1xf32> -> vector<8x1xf32>
    %76 = vector.broadcast %75 : vector<8x1xf32> to vector<8x8xf32>
    %77 = arith.mulf %72, %76 : vector<8x8xf32>
    %78 = arith.truncf %77 : vector<8x8xf32> to vector<8x8xbf16>
    %cst_32 = arith.constant dense<0.000000e+00> : vector<8x8xf32>
    %79 = tpu.matmul %78, %64, %cst_32 {dimension_numbers = #tpu.dot_dimension_numbers<[1], [0], [0], [1], [0, 0, 1, 1], [], []>} : vector<8x8xbf16>, vector<8x8xbf16>, vector<8x8xf32> -> vector<8x8xf32>
    %80 = arith.truncf %79 : vector<8x8xf32> to vector<8x8xbf16>
    %81 = vector.extract_strided_slice %16 {offsets = [16, 0], sizes = [8, 32], strides = [1, 1]} : vector<32x32xbf16> to vector<8x32xbf16>
    %cst_33 = arith.constant dense<0.000000e+00> : vector<8x32xf32>
    %82 = tpu.matmul %80, %81, %cst_33 {dimension_numbers = #tpu.dot_dimension_numbers<[1], [0], [0], [1], [0, 0, 1, 1], [], []>} : vector<8x8xbf16>, vector<8x32xbf16>, vector<8x32xf32> -> vector<8x32xf32>
    %83 = arith.addf %61, %82 : vector<8x32xf32>
    %84 = vector.extract_strided_slice %14 {offsets = [0, 24], sizes = [8, 8], strides = [1, 1]} : vector<8x96xbf16> to vector<8x8xbf16>
    %85 = vector.extract_strided_slice %14 {offsets = [0, 56], sizes = [8, 8], strides = [1, 1]} : vector<8x96xbf16> to vector<8x8xbf16>
    %86 = vector.extract_strided_slice %14 {offsets = [0, 88], sizes = [8, 8], strides = [1, 1]} : vector<8x96xbf16> to vector<8x8xbf16>
    %cst_34 = arith.constant dense<0.000000e+00> : vector<8x8xf32>
    %87 = tpu.matmul %84, %85, %cst_34 {dimension_numbers = #tpu.dot_dimension_numbers<[1], [1], [0], [0], [0, 0, 1, 0], [], []>} : vector<8x8xbf16>, vector<8x8xbf16>, vector<8x8xf32> -> vector<8x8xf32>
    %cst_35 = arith.constant 0.353553385 : f32
    %88 = vector.broadcast %cst_35 : f32 to vector<8x8xf32>
    %89 = arith.mulf %87, %88 : vector<8x8xf32>
    %cst_36 = arith.constant dense<0xFF800000> : vector<8xf32>
    %90 = vector.multi_reduction <maximumf>, %89, %cst_36 [1] : vector<8x8xf32> to vector<8xf32>
    %91 = vector.shape_cast %90 : vector<8xf32> to vector<8x1xf32>
    %92 = vector.broadcast %91 : vector<8x1xf32> to vector<8x8xf32>
    %93 = arith.subf %89, %92 : vector<8x8xf32>
    %94 = math.exp %93 : vector<8x8xf32>
    %cst_37 = arith.constant dense<0.000000e+00> : vector<8xf32>
    %95 = vector.multi_reduction <add>, %94, %cst_37 [1] : vector<8x8xf32> to vector<8xf32>
    %96 = vector.shape_cast %95 : vector<8xf32> to vector<8x1xf32>
    %97 = tpu.reciprocal %96 {approx = true} : vector<8x1xf32> -> vector<8x1xf32>
    %98 = vector.broadcast %97 : vector<8x1xf32> to vector<8x8xf32>
    %99 = arith.mulf %94, %98 : vector<8x8xf32>
    %100 = arith.truncf %99 : vector<8x8xf32> to vector<8x8xbf16>
    %cst_38 = arith.constant dense<0.000000e+00> : vector<8x8xf32>
    %101 = tpu.matmul %100, %86, %cst_38 {dimension_numbers = #tpu.dot_dimension_numbers<[1], [0], [0], [1], [0, 0, 1, 1], [], []>} : vector<8x8xbf16>, vector<8x8xbf16>, vector<8x8xf32> -> vector<8x8xf32>
    %102 = arith.truncf %101 : vector<8x8xf32> to vector<8x8xbf16>
    %103 = vector.extract_strided_slice %16 {offsets = [24, 0], sizes = [8, 32], strides = [1, 1]} : vector<32x32xbf16> to vector<8x32xbf16>
    %cst_39 = arith.constant dense<0.000000e+00> : vector<8x32xf32>
    %104 = tpu.matmul %102, %103, %cst_39 {dimension_numbers = #tpu.dot_dimension_numbers<[1], [0], [0], [1], [0, 0, 1, 1], [], []>} : vector<8x8xbf16>, vector<8x32xbf16>, vector<8x32xf32> -> vector<8x32xf32>
    %105 = arith.addf %83, %104 : vector<8x32xf32>
    %c0_40 = arith.constant 0 : index
    %c0_41 = arith.constant 0 : index
    %c0_42 = arith.constant 0 : index
    %c0_43 = arith.constant 0 : index
    %106 = vector.load %arg7[%c0_40, %c0_41, %c0_42, %c0_43] : memref<1x1x1x32xf32, #tpu.memory_space<vmem>>, vector<1x1x1x32xf32>
    %107 = vector.shape_cast %106 : vector<1x1x1x32xf32> to vector<1x32xf32>
    %108 = vector.broadcast %107 : vector<1x32xf32> to vector<8x32xf32>
    %109 = arith.addf %105, %108 : vector<8x32xf32>
    %110 = arith.addf %5, %109 : vector<8x32xf32>
    %c0_44 = arith.constant 0 : index
    %c0_45 = arith.constant 0 : index
    %c0_46 = arith.constant 0 : index
    %c0_47 = arith.constant 0 : index
    %111 = vector.load %arg8[%c0_44, %c0_45, %c0_46, %c0_47] : memref<1x1x1x32xf32, #tpu.memory_space<vmem>>, vector<1x1x1x32xf32>
    %112 = vector.shape_cast %111 : vector<1x1x1x32xf32> to vector<1x32xf32>
    %c0_48 = arith.constant 0 : index
    %c0_49 = arith.constant 0 : index
    %c0_50 = arith.constant 0 : index
    %c0_51 = arith.constant 0 : index
    %113 = vector.load %arg9[%c0_48, %c0_49, %c0_50, %c0_51] : memref<1x1x1x32xf32, #tpu.memory_space<vmem>>, vector<1x1x1x32xf32>
    %114 = vector.shape_cast %113 : vector<1x1x1x32xf32> to vector<1x32xf32>
    %cst_52 = arith.constant dense<0.000000e+00> : vector<8xf32>
    %115 = vector.multi_reduction <add>, %110, %cst_52 [1] : vector<8x32xf32> to vector<8xf32>
    %116 = vector.shape_cast %115 : vector<8xf32> to vector<8x1xf32>
    %cst_53 = arith.constant 3.200000e+01 : f32
    %117 = vector.broadcast %cst_53 : f32 to vector<8x1xf32>
    %118 = arith.divf %116, %117 : vector<8x1xf32>
    %119 = vector.broadcast %118 : vector<8x1xf32> to vector<8x32xf32>
    %120 = arith.subf %110, %119 : vector<8x32xf32>
    %121 = arith.mulf %120, %120 : vector<8x32xf32>
    %cst_54 = arith.constant dense<0.000000e+00> : vector<8xf32>
    %122 = vector.multi_reduction <add>, %121, %cst_54 [1] : vector<8x32xf32> to vector<8xf32>
    %123 = vector.shape_cast %122 : vector<8xf32> to vector<8x1xf32>
    %cst_55 = arith.constant 3.200000e+01 : f32
    %124 = vector.broadcast %cst_55 : f32 to vector<8x1xf32>
    %125 = arith.divf %123, %124 : vector<8x1xf32>
    %126 = vector.broadcast %118 : vector<8x1xf32> to vector<8x32xf32>
    %127 = arith.subf %110, %126 : vector<8x32xf32>
    %cst_56 = arith.constant 9.99999974E-6 : f32
    %128 = vector.broadcast %cst_56 : f32 to vector<8x1xf32>
    %129 = arith.addf %125, %128 : vector<8x1xf32>
    %130 = math.rsqrt %129 : vector<8x1xf32>
    %131 = vector.broadcast %130 : vector<8x1xf32> to vector<8x32xf32>
    %132 = arith.mulf %127, %131 : vector<8x32xf32>
    %133 = vector.broadcast %112 : vector<1x32xf32> to vector<8x32xf32>
    %134 = arith.mulf %132, %133 : vector<8x32xf32>
    %135 = vector.broadcast %114 : vector<1x32xf32> to vector<8x32xf32>
    %136 = arith.addf %134, %135 : vector<8x32xf32>
    %137 = arith.truncf %136 : vector<8x32xf32> to vector<8x32xbf16>
    %c0_57 = arith.constant 0 : index
    %c0_58 = arith.constant 0 : index
    %c0_59 = arith.constant 0 : index
    %c0_60 = arith.constant 0 : index
    %138 = vector.load %arg10[%c0_57, %c0_58, %c0_59, %c0_60] : memref<1x1x32x64xbf16, #tpu.memory_space<vmem>>, vector<1x1x32x64xbf16>
    %139 = vector.shape_cast %138 : vector<1x1x32x64xbf16> to vector<32x64xbf16>
    %cst_61 = arith.constant dense<0.000000e+00> : vector<8x64xf32>
    %140 = tpu.matmul %137, %139, %cst_61 {dimension_numbers = #tpu.dot_dimension_numbers<[1], [0], [0], [1], [0, 0, 1, 1], [], []>} : vector<8x32xbf16>, vector<32x64xbf16>, vector<8x64xf32> -> vector<8x64xf32>
    %c0_62 = arith.constant 0 : index
    %c0_63 = arith.constant 0 : index
    %c0_64 = arith.constant 0 : index
    %c0_65 = arith.constant 0 : index
    %141 = vector.load %arg11[%c0_62, %c0_63, %c0_64, %c0_65] : memref<1x1x1x64xf32, #tpu.memory_space<vmem>>, vector<1x1x1x64xf32>
    %142 = vector.shape_cast %141 : vector<1x1x1x64xf32> to vector<1x64xf32>
    %143 = vector.broadcast %142 : vector<1x64xf32> to vector<8x64xf32>
    %144 = arith.addf %140, %143 : vector<8x64xf32>
    %cst_66 = arith.constant 0.000000e+00 : f32
    %145 = vector.broadcast %cst_66 : f32 to vector<8x64xf32>
    %146 = arith.maximumf %144, %145 : vector<8x64xf32>
    %147 = arith.truncf %146 : vector<8x64xf32> to vector<8x64xbf16>
    %c0_67 = arith.constant 0 : index
    %c0_68 = arith.constant 0 : index
    %c0_69 = arith.constant 0 : index
    %c0_70 = arith.constant 0 : index
    %148 = vector.load %arg12[%c0_67, %c0_68, %c0_69, %c0_70] : memref<1x1x64x32xbf16, #tpu.memory_space<vmem>>, vector<1x1x64x32xbf16>
    %149 = vector.shape_cast %148 : vector<1x1x64x32xbf16> to vector<64x32xbf16>
    %cst_71 = arith.constant dense<0.000000e+00> : vector<8x32xf32>
    %150 = tpu.matmul %147, %149, %cst_71 {dimension_numbers = #tpu.dot_dimension_numbers<[1], [0], [0], [1], [0, 0, 1, 1], [], []>} : vector<8x64xbf16>, vector<64x32xbf16>, vector<8x32xf32> -> vector<8x32xf32>
    %c0_72 = arith.constant 0 : index
    %c0_73 = arith.constant 0 : index
    %c0_74 = arith.constant 0 : index
    %c0_75 = arith.constant 0 : index
    %151 = vector.load %arg13[%c0_72, %c0_73, %c0_74, %c0_75] : memref<1x1x1x32xf32, #tpu.memory_space<vmem>>, vector<1x1x1x32xf32>
    %152 = vector.shape_cast %151 : vector<1x1x1x32xf32> to vector<1x32xf32>
    %153 = vector.broadcast %152 : vector<1x32xf32> to vector<8x32xf32>
    %154 = arith.addf %150, %153 : vector<8x32xf32>
    %155 = arith.addf %136, %154 : vector<8x32xf32>
    %c0_76 = arith.constant 0 : index
    %c0_77 = arith.constant 0 : index
    %c0_78 = arith.constant 0 : index
    %c0_79 = arith.constant 0 : index
    %156 = vector.load %arg14[%c0_76, %c0_77, %c0_78, %c0_79] : memref<1x1x1x32xf32, #tpu.memory_space<vmem>>, vector<1x1x1x32xf32>
    %157 = vector.shape_cast %156 : vector<1x1x1x32xf32> to vector<1x32xf32>
    %c0_80 = arith.constant 0 : index
    %c0_81 = arith.constant 0 : index
    %c0_82 = arith.constant 0 : index
    %c0_83 = arith.constant 0 : index
    %158 = vector.load %arg15[%c0_80, %c0_81, %c0_82, %c0_83] : memref<1x1x1x32xf32, #tpu.memory_space<vmem>>, vector<1x1x1x32xf32>
    %159 = vector.shape_cast %158 : vector<1x1x1x32xf32> to vector<1x32xf32>
    %cst_84 = arith.constant dense<0.000000e+00> : vector<8xf32>
    %160 = vector.multi_reduction <add>, %155, %cst_84 [1] : vector<8x32xf32> to vector<8xf32>
    %161 = vector.shape_cast %160 : vector<8xf32> to vector<8x1xf32>
    %cst_85 = arith.constant 3.200000e+01 : f32
    %162 = vector.broadcast %cst_85 : f32 to vector<8x1xf32>
    %163 = arith.divf %161, %162 : vector<8x1xf32>
    %164 = vector.broadcast %163 : vector<8x1xf32> to vector<8x32xf32>
    %165 = arith.subf %155, %164 : vector<8x32xf32>
    %166 = arith.mulf %165, %165 : vector<8x32xf32>
    %cst_86 = arith.constant dense<0.000000e+00> : vector<8xf32>
    %167 = vector.multi_reduction <add>, %166, %cst_86 [1] : vector<8x32xf32> to vector<8xf32>
    %168 = vector.shape_cast %167 : vector<8xf32> to vector<8x1xf32>
    %cst_87 = arith.constant 3.200000e+01 : f32
    %169 = vector.broadcast %cst_87 : f32 to vector<8x1xf32>
    %170 = arith.divf %168, %169 : vector<8x1xf32>
    %171 = vector.broadcast %163 : vector<8x1xf32> to vector<8x32xf32>
    %172 = arith.subf %155, %171 : vector<8x32xf32>
    %cst_88 = arith.constant 9.99999974E-6 : f32
    %173 = vector.broadcast %cst_88 : f32 to vector<8x1xf32>
    %174 = arith.addf %170, %173 : vector<8x1xf32>
    %175 = math.rsqrt %174 : vector<8x1xf32>
    %176 = vector.broadcast %175 : vector<8x1xf32> to vector<8x32xf32>
    %177 = arith.mulf %172, %176 : vector<8x32xf32>
    %178 = vector.broadcast %157 : vector<1x32xf32> to vector<8x32xf32>
    %179 = arith.mulf %177, %178 : vector<8x32xf32>
    %180 = vector.broadcast %159 : vector<1x32xf32> to vector<8x32xf32>
    %181 = arith.addf %179, %180 : vector<8x32xf32>
    %c0_89 = arith.constant 0 : index
    %c0_90 = arith.constant 0 : index
    %182 = vector.load %arg22[%c0_89, %c0_90] : memref<8x32xf32, #tpu.memory_space<vmem>>, vector<8x32xf32>
    tpu.vector_store %arg22[%c0_89, %c0_90], %181 {strides = array<i32>} : memref<8x32xf32, #tpu.memory_space<vmem>>, vector<8x32xf32>,
    %c0_i32_91 = arith.constant 0 : i32
    %183 = arith.cmpi eq, %arg1, %c0_i32_91 : i32
    %184 = arith.extui %183 : i1 to i32
    %c0_i32_92 = arith.constant 0 : i32
    %185 = arith.cmpi ne, %184, %c0_i32_92 : i32
    scf.if %185 {
      %186 = arith.truncf %181 : vector<8x32xf32> to vector<8x32xbf16>
      %c0_93 = arith.constant 0 : index
      %c0_94 = arith.constant 0 : index
      %c0_95 = arith.constant 0 : index
      %187 = vector.load %arg16[%c0_93, %c0_94, %c0_95] : memref<1x32x32xbf16, #tpu.memory_space<vmem>>, vector<1x32x32xbf16>
      %188 = vector.shape_cast %187 : vector<1x32x32xbf16> to vector<32x32xbf16>
      %cst_96 = arith.constant dense<0.000000e+00> : vector<8x32xf32>
      %189 = tpu.matmul %186, %188, %cst_96 {dimension_numbers = #tpu.dot_dimension_numbers<[1], [0], [0], [1], [0, 0, 1, 1], [], []>} : vector<8x32xbf16>, vector<32x32xbf16>, vector<8x32xf32> -> vector<8x32xf32>
      %c0_97 = arith.constant 0 : index
      %c0_98 = arith.constant 0 : index
      %190 = vector.load %arg2[%c0_97, %c0_98] : memref<8x8xbf16, #tpu.memory_space<vmem>>, vector<8x8xbf16>
      %191 = arith.truncf %189 : vector<8x32xf32> to vector<8x32xbf16>
      %cst_99 = arith.constant dense<0.000000e+00> : vector<8x32xf32>
      %192 = tpu.matmul %190, %191, %cst_99 {dimension_numbers = #tpu.dot_dimension_numbers<[1], [0], [0], [1], [0, 0, 1, 1], [], []>} : vector<8x8xbf16>, vector<8x32xbf16>, vector<8x32xf32> -> vector<8x32xf32>
      %c0_100 = arith.constant 0 : index
      %c0_101 = arith.constant 0 : index
      %c0_102 = arith.constant 0 : index
      %193 = vector.load %arg17[%c0_100, %c0_101, %c0_102] : memref<1x1x32xf32, #tpu.memory_space<vmem>>, vector<1x1x32xf32>
      %194 = vector.shape_cast %193 : vector<1x1x32xf32> to vector<1x32xf32>
      %195 = vector.broadcast %194 : vector<1x32xf32> to vector<8x32xf32>
      %196 = arith.mulf %192, %195 : vector<8x32xf32>
      %c0_103 = arith.constant 0 : index
      %c0_104 = arith.constant 0 : index
      %c0_105 = arith.constant 0 : index
      %197 = vector.load %arg18[%c0_103, %c0_104, %c0_105] : memref<1x1x32xf32, #tpu.memory_space<vmem>>, vector<1x1x32xf32>
      %198 = vector.shape_cast %197 : vector<1x1x32xf32> to vector<1x32xf32>
      %199 = vector.broadcast %198 : vector<1x32xf32> to vector<8x32xf32>
      %200 = arith.addf %196, %199 : vector<8x32xf32>
      %cst_106 = arith.constant 0.000000e+00 : f32
      %201 = vector.broadcast %cst_106 : f32 to vector<8x32xf32>
      %202 = arith.maximumf %200, %201 : vector<8x32xf32>
      %c0_107 = arith.constant 0 : index
      %c0_108 = arith.constant 0 : index
      %203 = vector.load %arg22[%c0_107, %c0_108] : memref<8x32xf32, #tpu.memory_space<vmem>>, vector<8x32xf32>
      tpu.vector_store %arg22[%c0_107, %c0_108], %202 {strides = array<i32>} : memref<8x32xf32, #tpu.memory_space<vmem>>, vector<8x32xf32>,
      %cst_109 = arith.constant dense<0.000000e+00> : vector<32xf32>
      %204 = vector.multi_reduction <add>, %202, %cst_109 [0] : vector<8x32xf32> to vector<32xf32>
      %205 = vector.shape_cast %204 : vector<32xf32> to vector<1x32xf32>
      %206 = arith.truncf %205 : vector<1x32xf32> to vector<1x32xbf16>
      %c0_110 = arith.constant 0 : index
      %c0_111 = arith.constant 0 : index
      %c0_112 = arith.constant 0 : index
      %207 = vector.load %arg19[%c0_110, %c0_111, %c0_112] : memref<1x32x128xbf16, #tpu.memory_space<vmem>>, vector<1x32x128xbf16>
      %208 = vector.shape_cast %207 : vector<1x32x128xbf16> to vector<32x128xbf16>
      %cst_113 = arith.constant dense<0.000000e+00> : vector<1x128xf32>
      %209 = tpu.matmul %206, %208, %cst_113 {dimension_numbers = #tpu.dot_dimension_numbers<[1], [0], [0], [1], [0, 0, 1, 1], [], []>} : vector<1x32xbf16>, vector<32x128xbf16>, vector<1x128xf32> -> vector<1x128xf32>
      %c0_114 = arith.constant 0 : index
      %c0_115 = arith.constant 0 : index
      %c0_116 = arith.constant 0 : index
      %210 = vector.load %arg20[%c0_114, %c0_115, %c0_116] : memref<1x1x128xf32, #tpu.memory_space<vmem>>, vector<1x1x128xf32>
      %211 = vector.shape_cast %210 : vector<1x1x128xf32> to vector<1x128xf32>
      %212 = arith.addf %209, %211 : vector<1x128xf32>
      %c0_117 = arith.constant 0 : index
      %c0_118 = arith.constant 0 : index
      %213 = vector.load %arg21[%c0_117, %c0_118] : memref<1x128xf32, #tpu.memory_space<vmem>>, vector<1x128xf32>
      %214 = arith.addf %213, %212 : vector<1x128xf32>
      %c0_119 = arith.constant 0 : index
      %c0_120 = arith.constant 0 : index
      %215 = vector.load %arg21[%c0_119, %c0_120] : memref<1x128xf32, #tpu.memory_space<vmem>>, vector<1x128xf32>
      tpu.vector_store %arg21[%c0_119, %c0_120], %214 {strides = array<i32>} : memref<1x128xf32, #tpu.memory_space<vmem>>, vector<1x128xf32>,
    } else {
    }
    return
  }
  func.func @transform_0(%arg0: i32, %arg1: i32) -> (i32, i32) {
    %c0_i32 = arith.constant 0 : i32
    %c0_i32_0 = arith.constant 0 : i32
    %c0_i32_1 = arith.constant 0 : i32
    return %c0_i32, %c0_i32_0 : i32, i32
  }
  func.func @transform_1(%arg0: i32, %arg1: i32) -> (i32, i32) {
    %c0_i32 = arith.constant 0 : i32
    %c0_i32_0 = arith.constant 0 : i32
    %c0_i32_1 = arith.constant 0 : i32
    return %c0_i32, %c0_i32_0 : i32, i32
  }
  func.func @transform_2(%arg0: i32, %arg1: i32) -> (i32, i32, i32, i32) {
    %c0_i32 = arith.constant 0 : i32
    %c0_i32_0 = arith.constant 0 : i32
    %c0_i32_1 = arith.constant 0 : i32
    return %arg0, %arg1, %c0_i32, %c0_i32_0 : i32, i32, i32, i32
  }
  func.func @transform_3(%arg0: i32, %arg1: i32) -> (i32, i32, i32, i32) {
    %c0_i32 = arith.constant 0 : i32
    %c0_i32_0 = arith.constant 0 : i32
    %c0_i32_1 = arith.constant 0 : i32
    return %arg0, %arg1, %c0_i32, %c0_i32_0 : i32, i32, i32, i32
  }
  func.func @transform_4(%arg0: i32, %arg1: i32) -> (i32, i32, i32, i32) {
    %c0_i32 = arith.constant 0 : i32
    %c0_i32_0 = arith.constant 0 : i32
    %c0_i32_1 = arith.constant 0 : i32
    return %arg0, %arg1, %c0_i32, %c0_i32_0 : i32, i32, i32, i32
  }
  func.func @transform_5(%arg0: i32, %arg1: i32) -> (i32, i32, i32, i32) {
    %c0_i32 = arith.constant 0 : i32
    %c0_i32_0 = arith.constant 0 : i32
    %c0_i32_1 = arith.constant 0 : i32
    return %arg0, %arg1, %c0_i32, %c0_i32_0 : i32, i32, i32, i32
  }
  func.func @transform_6(%arg0: i32, %arg1: i32) -> (i32, i32, i32, i32) {
    %c0_i32 = arith.constant 0 : i32
    %c0_i32_0 = arith.constant 0 : i32
    %c0_i32_1 = arith.constant 0 : i32
    return %arg0, %arg1, %c0_i32, %c0_i32_0 : i32, i32, i32, i32
  }
  func.func @transform_7(%arg0: i32, %arg1: i32) -> (i32, i32, i32, i32) {
    %c0_i32 = arith.constant 0 : i32
    %c0_i32_0 = arith.constant 0 : i32
    %c0_i32_1 = arith.constant 0 : i32
    return %arg0, %arg1, %c0_i32, %c0_i32_0 : i32, i32, i32, i32
  }
  func.func @transform_8(%arg0: i32, %arg1: i32) -> (i32, i32, i32, i32) {
    %c0_i32 = arith.constant 0 : i32
    %c0_i32_0 = arith.constant 0 : i32
    %c0_i32_1 = arith.constant 0 : i32
    return %arg0, %arg1, %c0_i32, %c0_i32_0 : i32, i32, i32, i32
  }
  func.func @transform_9(%arg0: i32, %arg1: i32) -> (i32, i32, i32, i32) {
    %c0_i32 = arith.constant 0 : i32
    %c0_i32_0 = arith.constant 0 : i32
    %c0_i32_1 = arith.constant 0 : i32
    return %arg0, %arg1, %c0_i32, %c0_i32_0 : i32, i32, i32, i32
  }
  func.func @transform_10(%arg0: i32, %arg1: i32) -> (i32, i32, i32, i32) {
    %c0_i32 = arith.constant 0 : i32
    %c0_i32_0 = arith.constant 0 : i32
    %c0_i32_1 = arith.constant 0 : i32
    return %arg0, %arg1, %c0_i32, %c0_i32_0 : i32, i32, i32, i32
  }
  func.func @transform_11(%arg0: i32, %arg1: i32) -> (i32, i32, i32, i32) {
    %c0_i32 = arith.constant 0 : i32
    %c0_i32_0 = arith.constant 0 : i32
    %c0_i32_1 = arith.constant 0 : i32
    return %arg0, %arg1, %c0_i32, %c0_i32_0 : i32, i32, i32, i32
  }
  func.func @transform_12(%arg0: i32, %arg1: i32) -> (i32, i32, i32, i32) {
    %c0_i32 = arith.constant 0 : i32
    %c0_i32_0 = arith.constant 0 : i32
    %c0_i32_1 = arith.constant 0 : i32
    return %arg0, %arg1, %c0_i32, %c0_i32_0 : i32, i32, i32, i32
  }
  func.func @transform_13(%arg0: i32, %arg1: i32) -> (i32, i32, i32, i32) {
    %c0_i32 = arith.constant 0 : i32
    %c0_i32_0 = arith.constant 0 : i32
    %c0_i32_1 = arith.constant 0 : i32
    return %arg0, %arg1, %c0_i32, %c0_i32_0 : i32, i32, i32, i32
  }
  func.func @transform_14(%arg0: i32, %arg1: i32) -> (i32, i32, i32) {
    %c0_i32 = arith.constant 0 : i32
    %c0_i32_0 = arith.constant 0 : i32
    %c0_i32_1 = arith.constant 0 : i32
    return %arg0, %c0_i32, %c0_i32_0 : i32, i32, i32
  }
  func.func @transform_15(%arg0: i32, %arg1: i32) -> (i32, i32, i32) {
    %c0_i32 = arith.constant 0 : i32
    %c0_i32_0 = arith.constant 0 : i32
    %c0_i32_1 = arith.constant 0 : i32
    return %arg0, %c0_i32, %c0_i32_0 : i32, i32, i32
  }
  func.func @transform_16(%arg0: i32, %arg1: i32) -> (i32, i32, i32) {
    %c0_i32 = arith.constant 0 : i32
    %c0_i32_0 = arith.constant 0 : i32
    %c0_i32_1 = arith.constant 0 : i32
    return %arg0, %c0_i32, %c0_i32_0 : i32, i32, i32
  }
  func.func @transform_17(%arg0: i32, %arg1: i32) -> (i32, i32, i32) {
    %c0_i32 = arith.constant 0 : i32
    %c0_i32_0 = arith.constant 0 : i32
    %c0_i32_1 = arith.constant 0 : i32
    return %arg0, %c0_i32, %c0_i32_0 : i32, i32, i32
  }
  func.func @transform_18(%arg0: i32, %arg1: i32) -> (i32, i32, i32) {
    %c0_i32 = arith.constant 0 : i32
    %c0_i32_0 = arith.constant 0 : i32
    %c0_i32_1 = arith.constant 0 : i32
    return %arg0, %c0_i32, %c0_i32_0 : i32, i32, i32
  }
  func.func @transform_19(%arg0: i32, %arg1: i32) -> (i32, i32) {
    %c0_i32 = arith.constant 0 : i32
    %c0_i32_0 = arith.constant 0 : i32
    %c0_i32_1 = arith.constant 0 : i32
    return %c0_i32, %c0_i32_0 : i32, i32
  }
}

</mosaic_0001>

<bundles_post_ra>
// kernel: tpu_custom_call.1
= control target key start
LH: loop header
LB: loop body
LE: loop exit
PB: predicated region body
PF: predicated region fallthrough
CT: control target
= control target key end

     0   :  { %s3661_s0 = inlined_call_operand.hbm [shape: bf16[8,8], index: 0, kind: input, shape index: {}]   ;;  %s3662_s1 = inlined_call_operand.hbm [shape: f32[8,32], index: 1, kind: input, shape index: {}]   ;;  %s3663_s2 = inlined_call_operand.vmem [shape: bf16[2,1,32,96], index: 2, kind: input, shape index: {}]   ;;  %s3664_s3 = inlined_call_operand.vmem [shape: f32[2,1,1,96], index: 3, kind: input, shape index: {}]   ;;  %s3665_s4 = inlined_call_operand.vmem [shape: bf16[2,1,32,32], index: 4, kind: input, shape index: {}]   ;;  %s3666_s5 = inlined_call_operand.vmem [shape: f32[2,1,1,32], index: 5, kind: input, shape index: {}]   ;;  %s3667_s6 = inlined_call_operand.vmem [shape: f32[2,1,1,32], index: 6, kind: input, shape index: {}]   ;;  %s3668_s7 = inlined_call_operand.vmem [shape: f32[2,1,1,32], index: 7, kind: input, shape index: {}]   ;;  %s3669_s8 = inlined_call_operand.vmem [shape: bf16[2,1,32,64], index: 8, kind: input, shape index: {}]   ;;  %s3670_s9 = inlined_call_operand.vmem [shape: f32[2,1,1,64], index: 9, kind: input, shape index: {}]   ;;  %s3671_s10 = inlined_call_operand.vmem [shape: bf16[2,1,64,32], index: 10, kind: input, shape index: {}]   ;;  %s3672_s11 = inlined_call_operand.vmem [shape: f32[2,1,1,32], index: 11, kind: input, shape index: {}]   ;;  %s3673_s12 = inlined_call_operand.vmem [shape: f32[2,1,1,32], index: 12, kind: input, shape index: {}]   ;;  %s3674_s13 = inlined_call_operand.vmem [shape: f32[2,1,1,32], index: 13, kind: input, shape index: {}]   ;;  %s3675_s14 = inlined_call_operand.hbm [shape: bf16[2,32,32], index: 14, kind: input, shape index: {}]   ;;  %s3676_s15 = inlined_call_operand.vmem [shape: f32[2,1,32], index: 15, kind: input, shape index: {}]   ;;  %s3677_s16 = inlined_call_operand.vmem [shape: f32[2,1,32], index: 16, kind: input, shape index: {}]   ;;  %s3678_s17 = inlined_call_operand.hbm [shape: bf16[2,32,128], index: 17, kind: input, shape index: {}]   ;;  %s3679_s18 = inlined_call_operand.vmem [shape: f32[2,1,128], index: 18, kind: input, shape index: {}]   ;;  %s3680_s19 = inlined_call_operand.hbm [shape: f32[1,128], index: 19, kind: output, shape index: {}]  }
   0x1   :  { %3691 = sst [smem:[#allocation22_spill]] %s3661_s0 }
   0x2   :  { %3692 = sst [smem:[#allocation23_spill]] %s3662_s1 }
   0x3   :  { %3693 = sst [smem:[#allocation24_spill]] %s3663_s2 }
   0x4   :  { %3694 = sst [smem:[#allocation25_spill]] %s3664_s3 }
   0x5   :  { %3695 = sst [smem:[#allocation26_spill]] %s3665_s4 }
   0x6   :  { %3696 = sst [smem:[#allocation27_spill]] %s3668_s7 }
   0x7   :  { %3697 = sst [smem:[#allocation28_spill]] %s3669_s8 }
   0x8   :  { %3698 = sst [smem:[#allocation29_spill]] %s3670_s9 }
   0x9   :  { %3699 = sst [smem:[#allocation30_spill]] %s3671_s10 }
   0xa   :  { %3700 = sst [smem:[#allocation31_spill]] %s3672_s11 }
   0xb   :  { %3701 = sst [smem:[#allocation32_spill]] %s3673_s12 }
   0xc   :  { %3702 = sst [smem:[#allocation33_spill]] %s3674_s13 }
   0xd   :  { %3703 = sst [smem:[#allocation34_spill]] %s3675_s14 }
   0xe   :  { %3704 = sst [smem:[#allocation35_spill]] %s3676_s15 }
   0xf   :  { %3705 = sst [smem:[#allocation36_spill]] %s3677_s16 }
  0x10   :  { %3706 = sst [smem:[#allocation37_spill]] %s3678_s17 }
  0x11   :  { %3707 = sst [smem:[#allocation38_spill]] %s3679_s18 }
  0x12   :  { %3708 = sst [smem:[#allocation39_spill]] %s3680_s19 }
  0x13   :  { %24 = vsyncpa [#allocation4], 0 }
  0x14   :  { %25 = vsyncpa [#allocation7], 0 }
  0x15   :  { %26 = vsyncpa [#allocation5], 0  ;;  %s3207_s0 = smov 0   ;;  %s3209_s30 = smov 0  }
  0x16   :  { %s3211_s20 = smov 0   ;;  %s3213_s21 = smov 0  }
  0x17   :  { %s3215_s1 = smov 0   ;;  %s3217_s22 = smov 0  }
  0x18 LB: > { %3709 = sst [smem:[#allocation15_spill]] %s3068_s30  ;;  %s3236_s2 = sadd.s32 4294967295, %s3084_s22   ;;  %s3084_s22 = sphi %s3217_s22, %s32_s22   ;;  %s3080_s1 = sphi %s3215_s1, %s3767_s1   ;;  %s3076_s21 = sphi %s3213_s21, %s3766_s21   ;;  %s3072_s20 = sphi %s3211_s20, %s3765_s20   ;;  %s3068_s30 = sphi %s3209_s30, %s3764_s30   ;;  %s3064_s0 = sphi %s3207_s0, %s3763_s0  }
  0x19   : > { %3710 = sst [smem:[#allocation16_spill]] %s3072_s20  ;;  %p436_p0 = scmp.ne.s32.totalorder %s3072_s20, %s3068_s30 }
  0x1a   : > { %3711 = sst [smem:[#allocation17_spill]] %s3080_s1  ;;  %p437_p1 = scmp.eq.s32.totalorder %s3084_s22, 0 }
  0x1b   : > { %3712 = sst [smem:[#allocation18_spill]] %s3084_s22  ;;  %p442_p2 = scmp.ne.s32.totalorder %s3068_s30, %s3064_s0 }
  0x1c   : > { %3713 = sst [smem:[#allocation19_spill]] %s3236_s2  ;;  %p3681_p3 = scmp.eq.s32.totalorder %s3236_s2, 0 }
  0x1d   : > { %p438_p4 = por %p437_p1, %p436_p0  ;;  %p2514_p5 = scmp.ge.s32.totalorder %s3084_s22, 1 }
  0x1e   : > { %p3247_p6 = por %p3681_p3, %p442_p2  ;;  %p578_p7 = scmp.lt.s32.totalorder %s3084_s22, 3 }
  0x1f   : > { %s3086_s3 = smov [#allocation3]   ;;  %p2786_p10 = scmp.lt.s32.totalorder %s3084_s22, 2 }
  0x20   : > { %p3252_p8 = pnand %p2514_p5, %p578_p7  ;;  %s591_s26 = sshll.u32 %s3086_s3, 4  ;;  %s592_s26 = int_to_ptr.vmem [resolvable:$true] %s591_s26 }
  0x21   : > { %s733_s27 = sand.u32 1, %s3084_s22   ;;  %p3266_p12 = pnand %p2786_p10, %p438_p4 }
  0x22   : > { %p2770_p9 = pneg %p3252_p8  ;;  %s2901_s0 = scalar_lea.vmem %s592_s26, 64 }
  0x23   : > { %p2902_p0 = scmp.ne.s32.totalorder %s592_s26, %s2901_s0  ;;  %p2909_p5 = scmp.lt.s32.totalorder %s592_s26, %s592_s26 }
  0x24   : > { %p3262_p11 = pnand %p2770_p9, %p3681_p3  ;;  %p2910_p7 = scmp.lt.s32.totalorder %s2901_s0, %s2901_s0 }
  0x26   : > { %p2892_p13 = pneg %p3262_p11  ;;  %p2911_p9 = por %p2910_p7, %p2909_p5 }
  0x28   : > { %p2904_p1 = pnand %p2902_p0, %p2892_p13 }
  0x2a   : > { %p2905_p2 = pneg %p2904_p1 }
  0x2c   : > { %p2912_p3 = pnand %p2911_p9, %p2905_p2 }
  0x2e   : > { %2915 = shalt.err (!%p2912_p3)
}
  0x2f   : > { %s3718_s22 = sld [smem:[#allocation22_spill]]  ;;  %s44_s19 = sadd.s32 1, %s3080_s1 }
  0x30   : > { %s735_s18 = sand.u32 1, %s3072_s20   ;;  %p46_p4 = scmp.ge.s32.totalorder %s44_s19, 2 }
  0x31   : > { %s3282_s0 = sshll.u32 %s735_s18, 4  ;;  %s2582_s16 = sshll.u32 %s3080_s1, 8 }
  0x32   : > { %s3769_s19 = smov (%p46_p4, %s44_s19), 0  ;;  %s3720_s14 = sld [smem:[#allocation34_spill]] }
  0x33   : > { %3719 = sst [smem:[#allocation20_spill]] %s3769_s19  ;;  %s737_s13 = scalar_lea.vmem [#allocation8], %s3282_s0 }
  0x34   : > { %s744_s12 = sshll.u32 %s737_s13, 4  ;;  %s426_s11 = ssub.s32 %s3080_s1, %s3769_s19  ;;  %s745_s12 = int_to_ptr.vmem [resolvable:$true] %s744_s12 }
  0x35   : > { %2773 = dma.hbm_to_vmem [thread:$0]  (!%p3262_p11), %s3718_s22, 64, %s592_s26, [#allocation4]  }
  0x36   : > { %p427_p3 = scmp.eq.s32.totalorder %s426_s11, 0  ;;  %s3721_s22 = sadd.s32 1, %s3072_s20 }
  0x37   : > { %s3300_s18 = scalar_lea.sflag [#allocation4], %s733_s27  ;;  %p2918_p10 = pneg %p3266_p12 }
  0x38   : > { %s743_s15 = scalar_lea.hbm %s3720_s14, %s2582_s16  ;;  %s2929_s10 = scalar_lea.vmem %s745_s12, 256 }
  0x39   : > { %s3298_s26 = scalar_select %p427_p3, %s3072_s20, %s3721_s22  }
  0x3a   : > { %p2930_p0 = scmp.ne.s32.totalorder %s745_s12, %s2929_s10  ;;  %s3087_s23 = smov [#allocation8]  }
  0x3b   : > { %3722 = sst [smem:[#allocation21_spill]] %s3298_s26  ;;  %s2934_s3 = sshll.u32 %s3087_s23, 4  ;;  %s2935_s3 = int_to_ptr.vmem [resolvable:$false] %s2934_s3 }
  0x3c   : > { %p2932_p1 = pnand %p2930_p0, %p2918_p10  ;;  %s2936_s13 = scalar_lea.vmem %s2935_s3, 512 }
  0x3d   : > { %p2937_p5 = scmp.lt.s32.totalorder %s745_s12, %s2935_s3  ;;  %p2938_p7 = scmp.lt.s32.totalorder %s2936_s13, %s2929_s10 }
  0x3e   : > { %p2933_p2 = pneg %p2932_p1 }
  0x3f   : > { %p2939_p9 = por %p2938_p7, %p2937_p5 }
  0x41   : > { %p2940_p4 = pnand %p2939_p9, %p2933_p2 }
  0x43   : > { %2943 = shalt.err (!%p2940_p4)
}
  0x44   : > { %s3683_s11 = smov 64   ;;  %s3684_s27 = smov 4  }
  0x45   : > { %2780 = dma.hbm_to_vmem [thread:$0]  (!%p3266_p12), %s743_s15, 256, %s745_s12, %s3300_s18, %s3683_s11, %s3683_s11, %s3684_s27  }
  0x46   : > { %s3090_s22 = smov [#allocation6]   ;;  %s3723_s17 = sld [smem:[#allocation37_spill]] }
  0x47   : > { %s602_s23 = sshll.u32 %s3090_s22, 4  ;;  %s603_s23 = int_to_ptr.vmem [resolvable:$true] %s602_s23 }
  0x48   : > { %s2955_s14 = scalar_lea.vmem %s603_s23, 128  ;;  %p2963_p2 = scmp.lt.s32.totalorder %s603_s23, %s603_s23 }
  0x49   : > { %p2956_p3 = scmp.ne.s32.totalorder %s603_s23, %s2955_s14  ;;  %p2964_p5 = scmp.lt.s32.totalorder %s2955_s14, %s2955_s14 }
  0x4b   : > { %p2958_p0 = pnand %p2956_p3, %p2892_p13  ;;  %p2965_p7 = por %p2964_p5, %p2963_p2 }
  0x4c   : > { %s3318_s13 = scalar_lea.hbm %s3723_s17, %s2582_s16 }
  0x4d   : > { %p2959_p1 = pneg %p2958_p0 }
  0x4f   : > { %p2966_p9 = pnand %p2965_p7, %p2959_p1 }
  0x51   : > { %2969 = shalt.err (!%p2966_p9)
}
  0x52   : > { %s3724_s22 = sld [smem:[#allocation23_spill]]  ;;  %s770_s16 = scalar_lea.vmem [#allocation9], %s3282_s0 }
  0x53   : > { %s777_s3 = sshll.u32 %s770_s16, 4  ;;  %s3091_s14 = smov [#allocation9]   ;;  %s778_s3 = int_to_ptr.vmem [resolvable:$true] %s777_s3 }
  0x54   : > { %s2983_s10 = scalar_lea.vmem %s778_s3, 256  ;;  %s2988_s11 = sshll.u32 %s3091_s14, 4  ;;  %s2989_s11 = int_to_ptr.vmem [resolvable:$false] %s2988_s11 }
  0x55   : > { %p2984_p4 = scmp.ne.s32.totalorder %s778_s3, %s2983_s10  ;;  %s2990_s27 = scalar_lea.vmem %s2989_s11, 512 }
  0x56   : > { %p2991_p0 = scmp.lt.s32.totalorder %s778_s3, %s2989_s11  ;;  %p2992_p1 = scmp.lt.s32.totalorder %s2990_s27, %s2983_s10 }
  0x57   : > { %p2986_p13 = pnand %p2984_p4, %p2918_p10 }
  0x58   : > { %2776 = dma.hbm_to_vmem [thread:$0]  (!%p3262_p11), %s3724_s22, 128, %s603_s23, [#allocation7]  }
  0x59   : > { %p2987_p3 = pneg %p2986_p13  ;;  %p2993_p2 = por %p2992_p1, %p2991_p0 }
  0x5b   : > { %p2994_p5 = pnand %p2993_p2, %p2987_p3 }
  0x5d   : > { %2997 = shalt.err (!%p2994_p5)
}
  0x5e   : > { %s3725_s28 = smov 4   ;;  %s3726_s0 = smov 64  }
  0x5f   : > { %2783 = dma.hbm_to_vmem [thread:$0]  (!%p3266_p12), %s3318_s13, 256, %s778_s3, %s3300_s18, %s3726_s0, %s3726_s0, %s3725_s28  }
  0x60   : > { %795 = sbr.rel (%p3252_p8) target bundleno = 4234 (0x108a), region = 96  ;;  %p3727_p11 = scmp.eq.s32.totalorder (!%p3252_p8), %s3236_s2, 0 }
  0x65   : > { %3047 = dma.done.wait (%p3727_p11), [#allocation4], 64   ;;  %p3728_p10 = pmov %p3727_p11 }
  0x67   : > { %3049 = vsyncadd (%p3728_p10), [#allocation4], 4294967232  ;;  %p3729_p7 = pmov %p3728_p10 }
  0x69   : > { %3051 = dma.done.wait (%p3729_p7), [#allocation7], 128   ;;  %p3730_p9 = pmov %p3729_p7 }
  0x6a   : > { %s805_s29 = sand.u32 1, %s3236_s2   ;;  %s807_s18 = sand.u32 1, %s3068_s30  }
  0x6b   : > { %3053 = vsyncadd (%p3730_p9), [#allocation7], 4294967168  ;;  %s3351_s11 = sshll.u32 %s807_s18, 4  ;;  %s806_s25 = scalar_lea.sflag [#allocation4], %s805_s29 }
  0x6c   : > { %3055 = dma.done.wait (%p3247_p6), %s806_s25, 512  }
  0x6d   : > { %3057 = vsyncadd (%p3247_p6), %s806_s25, 4294966784  ;;  %p966_p8 = scmp.lt.s32.totalorder %s3076_s21, 1  ;;  %p1060_p12 = scmp.eq.s32.totalorder %s3076_s21, 0 }
  0x6e   : > { %s3732_s10 = sld [smem:[#allocation24_spill]]  ;;  %s818_s19 = scalar_lea.vmem [#allocation9], %s3351_s11  ;;  %v1066_v0 = vld [vmem:[#allocation6] sm:$0xff] (%p1060_p12)  ;;  %vm1067_vm0 = vcmask (%p1060_p12), 261120   ;;  %v3092_v1 = vmov (%p1060_p12), 0.0  }
  0x6f   : > { %s3361_s23 = scalar_select %p966_p8, %s3076_s21, 1  ;;  %1068 = vst.msk [vmem:[#allocation2] sm:$0xff] (%p1060_p12), %vm1067_vm0, %v1066_v0  ;;  %1069 = vst [vmem:[#allocation10] sm:$0x1] (%p1060_p12), %v3092_v1 }
  0x70   : > { %s3733_s4 = sld [smem:[#allocation26_spill]] }
  0x71   : > { %s2584_s24 = sshll.u32 %s3361_s23, 4  ;;  %s3735_s8 = sld [smem:[#allocation28_spill]] }
  0x72   : > { %s2587_s1 = sshll.u32 %s3361_s23, 5  ;;  %s3737_s27 = sld [smem:[#allocation30_spill]] }
  0x73   : > { %s3738_s13 = sld [smem:[#allocation31_spill]] }
  0x74   : > { %s974_s14 = scalar_lea.vmem %s3732_s10, %s2584_s24  ;;  %s3739_s20 = sld [smem:[#allocation32_spill]] }
  0x75   : > { %s3743_s17 = sld [smem:[#allocation38_spill]] }
  0x76   : > { %s3374_s29 = scalar_lea.vmem %s3733_s4, %s2584_s24  ;;  %s3741_s4 = sld [smem:[#allocation35_spill]] }
  0x77   : > { %s3391_s10 = scalar_lea.vmem %s3735_s8, %s2584_s24  ;;  %s3740_s8 = sld [smem:[#allocation33_spill]] }
  0x78   : > { %s3401_s26 = scalar_lea.vmem %s3737_s27, %s2587_s1  ;;  %s3742_s1 = sld [smem:[#allocation36_spill]] }
  0x79   : > { %s1037_s12 = scalar_lea.vmem %s3738_s13, %s3361_s23 }
  0x7a   : > { %s1043_s16 = scalar_lea.vmem %s3739_s20, %s3361_s23  ;;  %1065 = sbr.rel (!%p1060_p12) target bundleno = 127 (0x7f), region = 116 }
  0x7b   : > { %s1058_s13 = scalar_lea.vmem %s3743_s17, %s3361_s23 }
  0x7c   : > { %s1052_s2 = scalar_lea.vmem %s3741_s4, %s3361_s23 }
  0x7d   : > { %s1049_s30 = scalar_lea.vmem %s3740_s8, %s3361_s23 }
  0x7e   : > { %s1055_s27 = scalar_lea.vmem %s3742_s1, %s3361_s23 }
  0x7f PF: > { %v2858_v2 = vld [vmem:[%s974_s14 + $0x8] sm:$0xff]   ;;  %v3093_v3 = vmov 0.0   ;;  %v2859_v4 = vld [vmem:[%s974_s14] sm:$0xff]   ;;  %vm3094_vm1 = vmmov 0   ;;  %vm1095_vm2 = vcmask 261120   ;;  %s3744_s8 = sld [smem:[#allocation25_spill]]  ;;  %s3747_s7 = scalar_lea.vmem %s3667_s6, %s3361_s23 }
  0x80   : > { %2632 = vmatprep.subr.bf16.mxu0 %v3093_v3  ;;  %2640 = vmatprep.subr.bf16.mxu1 %v3093_v3  ;;  %v3434_v5 = vld [vmem:[#allocation2] sm:$0xff]  ;;  %s3095_s20 = smov 120   ;;  %s3096_s21 = smov 96   ;;  %vm1147_vm3 = vcmask 64512   ;;  %vm1212_vm4 = vcmask 1043456   ;;  %vm1926_vm5 = vcmask 523264  }
  0x81   : > { %2633 = vmatpush3.bf16.msra.mxu0 %v2858_v2  ;;  %2636 = vmatprep.mubr.msk.bf16.mxu0 %vm3094_vm1, %v3093_v3  ;;  %v1071_v6 = vpack.c.bf16 %v3434_v5, %v3434_v5  ;;  %s3097_s22 = smov 88   ;;  %s3098_s14 = smov 64   ;;  %v1140_v53 = vld [vmem:[%s3374_s29] sm:$0xf]  ;;  %v1141_v55 = vld [vmem:[%s3374_s29 + $0x4] sm:$0xf] }
  0x82   : > { %2634 = vmatprep.subr.bf16.mxu0 %v3093_v3  ;;  %2642 = vmatprep.mubr.msk.bf16.mxu1 %vm3094_vm1, %v3093_v3  ;;  %s3099_s15 = smov 56   ;;  %s3100_s24 = smov 112   ;;  %v1419_v54 = vsel %vm1212_vm4, %v1140_v53, 0  ;;  %v1373_v56 = vsel %vm1212_vm4, %v1141_v55, 0 }
  0x83   : > { %s3101_s3 = smov 80   ;;  %s3102_s28 = smov 72  }
  0x84   : > { %s3103_s0 = smov 104   ;;  %s3104_s18 = smov 48  }
  0x85   : > { %2635 = vmatpush3.bf16.msra.mxu0 %v2859_v4  ;;  %s3745_s9 = scalar_lea.vmem %s3744_s8, %s3361_s23  ;;  %s3105_s1 = smov 40  }
  0x86   : > { %2646 = vmatprep.subr.bf16.mxu0 %v3093_v3  ;;  %v2538_v7 = vld [vmem:[%s3745_s9] ss:$0 sm:$0xff] }
  0x88   : > { %2637 = vmatmul.mubr.msk.bf16.vlgmr.msra.gmra.mxu0 %vm1095_vm2, %v1071_v6 }
  0x89   : > { %2648 = vmatprep.mubr.msk.bf16.mxu0 %vm3094_vm1, %v3093_v3 }
 0x148   : > { %v1133_v8 = vpop.f32.mrf.mxu0 }
 0x149   : > { %v1134_v9 = vadd.f32 %v2538_v7, %v1133_v8 }
 0x14a   : > { %v2638_v10 = vpop.f32.mrf.mxu0 }
 0x14b   : > { %v3450_v11 = vpack.c.bf16 %v1134_v9, %v1134_v9 }
 0x14c   : > { %v1136_v12 = vpop.f32.mrf.mxu0 }
 0x14d   : > { %1257 = vrot.lane.b32.xlu1 %v3450_v11, %s3095_s20  ;;  %1145 = vrot.lane.b32.xlu0 %v3450_v11, %s3096_s21  ;;  %s3748_s20 = sld [smem:[#allocation27_spill]] }
 0x14e   : > { %v2639_v13 = vpop.f32.mrf.mxu0 }
 0x151   : > { %1259 = vrot.lane.b32.xlu0 %v3450_v11, %s3097_s22 }
 0x153   : > { %s3749_s21 = scalar_lea.vmem %s3748_s20, %s3361_s23  ;;  %s3106_s20 = smov [#allocation10]  }
 0x1bf   : > { %v1146_v14 = vpop.permute.xlu0 %1145  ;;  %v1258_v18 = vpop.permute.xlu1 %1257 }
 0x1c0   : > { %v1152_v15 = vsel %vm1147_vm3, %v1146_v14, 0 }
 0x1c1   : > { %2641 = vmatpush3.bf16.xpose.msra.mxu1 %v1152_v15 }
 0x1c2   : > { %2652 = vmatprep.subr.bf16.mxu1 %v3093_v3 }
 0x1c3   : > { %v1260_v16 = vpop.permute.xlu0 %1259 }
 0x1c4   : > { %v1265_v17 = vsel %vm1147_vm3, %v1260_v16, 0 }
 0x1c8   : > { %2643 = vmatmul.mubr.msk.bf16.vlgmr.msra.gmra.mxu1 %vm1147_vm3, %v3450_v11 }
 0x1c9   : > { %2653 = vmatpush3.bf16.xpose.msra.mxu1 %v1265_v17  ;;  %2654 = vmatprep.mubr.msk.bf16.mxu1 %vm3094_vm1, %v3093_v3 }
 0x1ca   : > { %2664 = vmatprep.subr.bf16.mxu1 %v3093_v3 }
 0x1d0   : > { %2655 = vmatmul.mubr.msk.bf16.vlgmr.msra.gmra.mxu1 %vm1147_vm3, %v1258_v18 }
 0x1d1   : > { %2666 = vmatprep.mubr.msk.bf16.mxu1 %vm3094_vm1, %v3093_v3  ;;  %2665 = vmatpush3.bf16.msra.mxu1 %v1373_v56 }
 0x1d2   : > { %2676 = vmatprep.subr.bf16.mxu1 %v3093_v3 }
 0x288   : > { %v1188_v19 = vpop.f32.mrf.mxu1 }
 0x289   : > { %v1194_v20 = vmul.f32 0.35355338, %v1188_v19 }
 0x28a   : > { %v2644_v21 = vpop.f32.mrf.mxu1 }
 0x28b   : > { %v1195_v22 = vsel %vm1147_vm3, %v1194_v20, -inf }
 0x28c   : > { %1196 = vmax.xlane.f32.xlu1 %v1195_v22  ;;  %v1191_v23 = vpop.f32.mrf.mxu1 }
 0x28e   : > { %v2645_v24 = vpop.f32.mrf.mxu1 }
 0x290   : > { %v1301_v25 = vpop.f32.mrf.mxu1 }
 0x291   : > { %v1307_v26 = vmul.f32 0.35355338, %v1301_v25 }
 0x292   : > { %v2656_v27 = vpop.f32.mrf.mxu1 }
 0x293   : > { %v1308_v28 = vsel %vm1147_vm3, %v1307_v26, -inf }
 0x294   : > { %1309 = vmax.xlane.f32.xlu0 %v1308_v28  ;;  %v1304_v29 = vpop.f32.mrf.mxu1 }
 0x296   : > { %v2657_v30 = vpop.f32.mrf.mxu1 }
 0x315   : > { %v1197_v31 = vpop.xlane.xlu1 %1196 }
 0x316   : > { %v1198_v32 = vsub.f32 %v1194_v20, %v1197_v31 }
 0x318   : > { %v1199_v33 = vmul.f32 1.442695, %v1198_v32 }
 0x31a   : > { %2870 = vpow2.f32 %v1199_v33 }
 0x31d   : > { %v1310_v34 = vpop.xlane.xlu0 %1309 }
 0x31e   : > { %v1311_v35 = vsub.f32 %v1307_v26, %v1310_v34 }
 0x320   : > { %v1312_v36 = vmul.f32 1.442695, %v1311_v35 }
 0x322   : > { %2872 = vpow2.f32 %v1312_v36 }
 0x327   : > { %v2871_v37 = vpop.eup %2870 }
 0x328   : > { %v1201_v38 = vsel %vm1147_vm3, %v2871_v37, 0.0 }
 0x329   : > { %1202 = vadd.xlane.f32.xlu0 %v1201_v38  ;;  %v1142_v38 = vld [vmem:[%s3374_s29 + $0x8] sm:$0xf] }
 0x32f   : > { %v2873_v39 = vpop.eup %2872 }
 0x330   : > { %v1314_v40 = vsel %vm1147_vm3, %v2873_v39, 0.0 }
 0x331   : > { %1315 = vadd.xlane.f32.xlu1 %v1314_v40 }
 0x33f   : > { %1207 = vrot.lane.b32.xlu0 %v3450_v11, %s3098_s14 }
 0x342   : > { %1320 = vrot.lane.b32.xlu1 %v3450_v11, %s3099_s15  ;;  %s3750_s15 = sld [smem:[#allocation29_spill]] }
 0x343   : > { %1461 = vrot.lane.b32.xlu0 %v3450_v11, %s3100_s24 }
 0x346   : > { %1463 = vrot.lane.b32.xlu1 %v3450_v11, %s3101_s3 }
 0x348   : > { %s3751_s24 = scalar_lea.vmem %s3750_s15, %s3361_s23 }
 0x3b2   : > { %v1203_v41 = vpop.xlane.xlu0 %1202 }
 0x3b3   : > { %2874 = vrcp.f32 %v1203_v41 }
 0x3b6   : > { %v1208_v42 = vpop.permute.xlu0 %1207 }
 0x3b7   : > { %v1214_v43 = vsel %vm1212_vm4, %v1208_v42, 0 }
 0x3b8   : > { %2647 = vmatpush3.bf16.msra.mxu0 %v1214_v43 }
 0x3b9   : > { %2658 = vmatprep.subr.bf16.mxu0 %v3093_v3 }
 0x3ba   : > { %v1316_v44 = vpop.xlane.xlu1 %1315  ;;  %v1462_v7 = vpop.permute.xlu0 %1461 }
 0x3bb   : > { %2876 = vrcp.f32 %v1316_v44 }
 0x3be   : > { %v1321_v47 = vpop.permute.xlu1 %1320 }
 0x3bf   : > { %v1326_v49 = vsel %vm1212_vm4, %v1321_v47, 0 }
 0x3c0   : > { %v2875_v45 = vpop.eup %2874 }
 0x3c1   : > { %v1205_v46 = vmul.f32 %v2875_v45, %v2871_v37 }
 0x3c2   : > { %v1464_v62 = vpop.permute.xlu1 %1463 }
 0x3c3   : > { %v1206_v48 = vpack.c.bf16 %v1205_v46, %v1205_v46  ;;  %v1469_v2 = vsel %vm1147_vm3, %v1464_v62, 0 }
 0x3c5   : > { %2649 = vmatmul.mubr.msk.bf16.vlgmr.msra.gmra.mxu0 %vm1147_vm3, %v1206_v48 }
 0x3c6   : > { %2659 = vmatpush3.bf16.msra.mxu0 %v1326_v49  ;;  %2660 = vmatprep.mubr.msk.bf16.mxu0 %vm3094_vm1, %v3093_v3 }
 0x3c7   : > { %2670 = vmatprep.subr.bf16.mxu0 %v3093_v3 }
 0x3c8   : > { %v2877_v50 = vpop.eup %2876 }
 0x3c9   : > { %v1318_v51 = vmul.f32 %v2877_v50, %v2873_v39  ;;  %v1577_v39 = vsel %vm1212_vm4, %v1142_v38, 0 }
 0x3cb   : > { %v1319_v52 = vpack.c.bf16 %v1318_v51, %v1318_v51 }
 0x3cd   : > { %2661 = vmatmul.mubr.msk.bf16.vlgmr.msra.gmra.mxu0 %vm1147_vm3, %v1319_v52 }
 0x3ce   : > { %2672 = vmatprep.mubr.msk.bf16.mxu0 %vm3094_vm1, %v3093_v3  ;;  %2671 = vmatpush3.bf16.msra.mxu0 %v1419_v54 }
 0x3cf   : > { %2682 = vmatprep.subr.bf16.mxu0 %v3093_v3 }
 0x485   : > { %v1250_v57 = vpop.f32.mrf.mxu0 }
 0x486   : > { %v1256_v58 = vpack.c.bf16 %v1250_v57, %v1250_v57 }
 0x487   : > { %v2650_v59 = vpop.f32.mrf.mxu0 }
 0x488   : > { %2673 = vmatmul.mubr.msk.bf16.vlgmr.msra.gmra.mxu0 %vm1147_vm3, %v1256_v58 }
 0x489   : > { %v1253_v60 = vpop.f32.mrf.mxu0  ;;  %2684 = vmatprep.mubr.msk.bf16.mxu0 %vm3094_vm1, %v3093_v3 }
 0x48b   : > { %v2651_v61 = vpop.f32.mrf.mxu0 }
 0x48d   : > { %v1362_v63 = vpop.f32.mrf.mxu0 }
 0x48e   : > { %v1368_v0 = vpack.c.bf16 %v1362_v63, %v1362_v63 }
 0x48f   : > { %v2662_v1 = vpop.f32.mrf.mxu0 }
 0x490   : > { %2667 = vmatmul.mubr.msk.bf16.vlgmr.msra.gmra.mxu1 %vm1147_vm3, %v1368_v0 }
 0x491   : > { %2677 = vmatpush3.bf16.xpose.msra.mxu1 %v1469_v2  ;;  %v1365_v4 = vpop.f32.mrf.mxu0  ;;  %2678 = vmatprep.mubr.msk.bf16.mxu1 %vm3094_vm1, %v3093_v3  ;;  %v1143_v2 = vld [vmem:[%s3374_s29 + $0xc] sm:$0xf]  ;;  %s3746_s29 = scalar_lea.vmem %s3666_s5, %s3361_s23 }
 0x492   : > { %2688 = vmatprep.subr.bf16.mxu1 %v3093_v3  ;;  %v1736_v4 = vsel %vm1212_vm4, %v1143_v2, 0 }
 0x493   : > { %v2663_v6 = vpop.f32.mrf.mxu0 }
 0x498   : > { %2679 = vmatmul.mubr.msk.bf16.vlgmr.msra.gmra.mxu1 %vm1147_vm3, %v1462_v7 }
 0x499   : > { %2690 = vmatprep.mubr.msk.bf16.mxu1 %vm3094_vm1, %v3093_v3  ;;  %2689 = vmatpush3.bf16.msra.mxu1 %v1577_v39  ;;  %v2864_v39 = vld [vmem:[%s3401_s26 + $0x8] sm:$0xff]  }
 0x49a   : > { %2700 = vmatprep.subr.bf16.mxu1 %v3093_v3 }
 0x548   : > { %v1455_v8 = vpop.f32.mrf.mxu0 }
 0x54a   : > { %v2674_v9 = vpop.f32.mrf.mxu0 }
 0x54c   : > { %v1458_v10 = vpop.f32.mrf.mxu0 }
 0x54e   : > { %v2675_v12 = vpop.f32.mrf.mxu0 }
 0x550   : > { %v1409_v13 = vpop.f32.mrf.mxu1 }
 0x551   : > { %v3501_v14 = vadd.f32 %v1455_v8, %v1409_v13  ;;  %v2554_v13 = vld [vmem:[%s3746_s29] ss:$0 sm:$0xff] }
 0x552   : > { %v2668_v15 = vpop.f32.mrf.mxu1 }
 0x554   : > { %v1412_v16 = vpop.f32.mrf.mxu1 }
 0x556   : > { %v2669_v17 = vpop.f32.mrf.mxu1 }
 0x558   : > { %v1505_v18 = vpop.f32.mrf.mxu1 }
 0x559   : > { %v1511_v19 = vmul.f32 0.35355338, %v1505_v18 }
 0x55a   : > { %v2680_v20 = vpop.f32.mrf.mxu1 }
 0x55b   : > { %v1512_v21 = vsel %vm1147_vm3, %v1511_v19, -inf }
 0x55c   : > { %1513 = vmax.xlane.f32.xlu1 %v1512_v21  ;;  %v1508_v22 = vpop.f32.mrf.mxu1 }
 0x55e   : > { %v2681_v23 = vpop.f32.mrf.mxu1 }
 0x56d   : > { %1622 = vrot.lane.b32.xlu1 %v3450_v11, %s3102_s28 }
 0x571   : > { %1620 = vrot.lane.b32.xlu1 %v3450_v11, %s3103_s0 }
 0x5e5   : > { %v1514_v24 = vpop.xlane.xlu1 %1513 }
 0x5e6   : > { %v1515_v25 = vsub.f32 %v1511_v19, %v1514_v24 }
 0x5e8   : > { %v1516_v26 = vmul.f32 1.442695, %v1515_v25 }
 0x5e9   : > { %v1623_v34 = vpop.permute.xlu1 %1622 }
 0x5ea   : > { %2878 = vpow2.f32 %v1516_v26  ;;  %v1628_v36 = vsel %vm1147_vm3, %v1623_v34, 0  ;;  %v2860_v26 = vld [vmem:[%s3391_s10 + $0x8] sm:$0xff]  }
 0x5ed   : > { %v1621_v37 = vpop.permute.xlu1 %1620 }
 0x5f7   : > { %v2879_v27 = vpop.eup %2878 }
 0x5f8   : > { %v1518_v28 = vsel %vm1147_vm3, %v2879_v27, 0.0 }
 0x5f9   : > { %1519 = vadd.xlane.f32.xlu0 %v1518_v28  ;;  %v2863_v28 = vld [vmem:[%s3401_s26 + $0x10] sm:$0xff]  }
 0x60f   : > { %1524 = vrot.lane.b32.xlu0 %v3450_v11, %s3104_s18 }
 0x682   : > { %v1520_v29 = vpop.xlane.xlu0 %1519 }
 0x683   : > { %2880 = vrcp.f32 %v1520_v29 }
 0x686   : > { %v1525_v30 = vpop.permute.xlu0 %1524 }
 0x687   : > { %v1530_v31 = vsel %vm1212_vm4, %v1525_v30, 0 }
 0x688   : > { %2683 = vmatpush3.bf16.msra.mxu0 %v1530_v31 }
 0x689   : > { %2694 = vmatprep.subr.bf16.mxu0 %v3093_v3 }
 0x690   : > { %v2881_v32 = vpop.eup %2880 }
 0x691   : > { %v1522_v33 = vmul.f32 %v2881_v32, %v2879_v27  ;;  %v2861_v27 = vld [vmem:[%s3391_s10] sm:$0xff]  }
 0x693   : > { %v1523_v35 = vpack.c.bf16 %v1522_v33, %v1522_v33  ;;  %v2555_v33 = vld [vmem:[%s3747_s7] ss:$0 sm:$0xff] }
 0x695   : > { %2685 = vmatmul.mubr.msk.bf16.vlgmr.msra.gmra.mxu0 %vm1147_vm3, %v1523_v35  ;;  %v2556_v35 = vld [vmem:[%s3749_s21] ss:$0 sm:$0xff]  ;;  %s2208_s21 = sshll.u32 %s3106_s20, 4  ;;  %s2209_s21 = int_to_ptr.vmem [resolvable:$true] %s2208_s21 }
 0x696   : > { %2695 = vmatpush3.bf16.xpose.msra.mxu0 %v1628_v36  ;;  %2696 = vmatprep.mubr.msk.bf16.mxu0 %vm3094_vm1, %v3093_v3  ;;  %s2998_s22 = scalar_lea.vmem %s2209_s21, 16  ;;  %s3004_s23 = scalar_lea.vmem %s2209_s21, 32 }
 0x697   : > { %2706 = vmatprep.subr.bf16.mxu0 %v3093_v3  ;;  %p2999_p4 = scmp.ne.s32.totalorder %s2209_s21, %s2998_s22  ;;  %p3005_p0 = scmp.lt.s32.totalorder %s2209_s21, %s2209_s21 }
 0x698   : > { %p3006_p1 = scmp.lt.s32.totalorder %s3004_s23, %s2998_s22 }
 0x69a   : > { %p3007_p2 = por %p3006_p1, %p3005_p0 }
 0x69d   : > { %2697 = vmatmul.mubr.msk.bf16.vlgmr.msra.gmra.mxu0 %vm1147_vm3, %v1621_v37 }
 0x69e   : > { %2708 = vmatprep.mubr.msk.bf16.mxu0 %vm3094_vm1, %v3093_v3  ;;  %2707 = vmatpush3.bf16.msra.mxu0 %v1736_v4  ;;  %v2567_v4 = vld [vmem:[%s1043_s16] ss:$0 sm:$0xff] }
 0x69f   : > { %2720 = vmatprep.subr.bf16.mxu0 %v3093_v3 }
 0x755   : > { %v1566_v40 = vpop.f32.mrf.mxu0 }
 0x756   : > { %v1572_v41 = vpack.c.bf16 %v1566_v40, %v1566_v40  ;;  %v2865_v40 = vld [vmem:[%s3401_s26] sm:$0xff]  }
 0x757   : > { %v2686_v42 = vpop.f32.mrf.mxu0 }
 0x758   : > { %2691 = vmatmul.mubr.msk.bf16.vlgmr.msra.gmra.mxu1 %vm1147_vm3, %v1572_v41  ;;  %v2557_v41 = vld [vmem:[%s3751_s24] ss:$0 sm:$0xff] }
 0x759   : > { %v1569_v43 = vpop.f32.mrf.mxu0  ;;  %2702 = vmatprep.mubr.msk.bf16.mxu1 %vm3094_vm1, %v3093_v3 }
 0x75b   : > { %v2687_v44 = vpop.f32.mrf.mxu0 }
 0x75d   : > { %v1664_v45 = vpop.f32.mrf.mxu0 }
 0x75e   : > { %v1670_v46 = vmul.f32 0.35355338, %v1664_v45 }
 0x75f   : > { %v2698_v47 = vpop.f32.mrf.mxu0 }
 0x760   : > { %v1671_v48 = vsel %vm1147_vm3, %v1670_v46, -inf }
 0x761   : > { %1672 = vmax.xlane.f32.xlu0 %v1671_v48  ;;  %v1667_v49 = vpop.f32.mrf.mxu0 }
 0x762   : > { %v2561_v49 = vld [vmem:[%s1037_s12] ss:$0 sm:$0xff]  ;;  %s3753_s12 = scalar_lea.vmem [#allocation8], %s3351_s11  ;;  %s3759_s11 = sld [smem:[#allocation19_spill]] }
 0x763   : > { %v2699_v50 = vpop.f32.mrf.mxu0  ;;  %s3754_s0 = smov %s3753_s12 }
 0x768   : > { %p2789_p6 = scmp.eq.s32.totalorder %s3759_s11, 1 }
 0x76a   : > { %p3000_p13 = pnand %p2999_p4, %p2789_p6 }
 0x76c   : > { %p3001_p3 = pneg %p3000_p13 }
 0x76e   : > { %p3008_p5 = pnand %p3007_p2, %p3001_p3 }
 0x777   : > { %1683 = vrot.lane.b32.xlu0 %v3450_v11, %s3105_s1 }
 0x7ea   : > { %v1673_v51 = vpop.xlane.xlu0 %1672 }
 0x7eb   : > { %v1674_v52 = vsub.f32 %v1670_v46, %v1673_v51 }
 0x7ed   : > { %v1675_v53 = vmul.f32 1.442695, %v1674_v52 }
 0x7ee   : > { %v1684_v54 = vpop.permute.xlu0 %1683 }
 0x7ef   : > { %2882 = vpow2.f32 %v1675_v53  ;;  %v1689_v55 = vsel %vm1212_vm4, %v1684_v54, 0 }
 0x7f0   : > { %2701 = vmatpush3.bf16.msra.mxu1 %v1689_v55 }
 0x7f1   : > { %2712 = vmatprep.subr.bf16.mxu1 %v3093_v3 }
 0x7fc   : > { %v2883_v56 = vpop.eup %2882 }
 0x7fd   : > { %v1677_v57 = vsel %vm1147_vm3, %v2883_v56, 0.0 }
 0x7fe   : > { %1678 = vadd.xlane.f32.xlu1 %v1677_v57 }
 0x818   : > { %v1613_v58 = vpop.f32.mrf.mxu1 }
 0x819   : > { %v1619_v59 = vadd.f32 %v1613_v58, %v3501_v14 }
 0x81a   : > { %v2692_v60 = vpop.f32.mrf.mxu1 }
 0x81c   : > { %v1616_v11 = vpop.f32.mrf.mxu1 }
 0x81e   : > { %v2693_v61 = vpop.f32.mrf.mxu1 }
 0x81f   : > { %v2866_v61 = vld [vmem:[%s3753_s12 + $0x8] sm:$0xff]  }
 0x887   : > { %v1679_v62 = vpop.xlane.xlu1 %1678 }
 0x888   : > { %2884 = vrcp.f32 %v1679_v62  ;;  %v2867_v62 = vld [vmem:[%s3754_s0] sm:$0xff]  }
 0x895   : > { %v2885_v63 = vpop.eup %2884 }
 0x896   : > { %v1681_v0 = vmul.f32 %v2885_v63, %v2883_v56 }
 0x898   : > { %v1682_v1 = vpack.c.bf16 %v1681_v0, %v1681_v0 }
 0x89a   : > { %2703 = vmatmul.mubr.msk.bf16.vlgmr.msra.gmra.mxu1 %vm1147_vm3, %v1682_v1 }
 0x89b   : > { %2716 = vmatprep.mubr.msk.bf16.mxu1 %vm3094_vm1, %v3093_v3  ;;  %2713 = vmatpush3.bf16.msra.mxu1 %v2860_v26 }
 0x89c   : > { %2714 = vmatprep.subr.bf16.mxu1 %v3093_v3 }
 0x89f   : > { %2715 = vmatpush3.bf16.msra.mxu1 %v2861_v27 }
 0x8a0   : > { %2732 = vmatprep.subr.bf16.mxu1 %v3093_v3 }
 0x95a   : > { %v1725_v6 = vpop.f32.mrf.mxu1 }
 0x95b   : > { %v1731_v7 = vpack.c.bf16 %v1725_v6, %v1725_v6 }
 0x95c   : > { %v2704_v8 = vpop.f32.mrf.mxu1 }
 0x95d   : > { %2709 = vmatmul.mubr.msk.bf16.vlgmr.msra.gmra.mxu0 %vm1147_vm3, %v1731_v7  ;;  %v2568_v7 = vld [vmem:[%s1049_s30] ss:$0 sm:$0xff] }
 0x95e   : > { %v1728_v9 = vpop.f32.mrf.mxu1  ;;  %2728 = vmatprep.mubr.msk.bf16.mxu0 %vm3094_vm1, %v3093_v3 }
 0x960   : > { %v2705_v10 = vpop.f32.mrf.mxu1 }
 0xa1d   : > { %v1772_v12 = vpop.f32.mrf.mxu0 }
 0xa1e   : > { %v1778_v14 = vadd.f32 %v1772_v12, %v1619_v59 }
 0xa1f   : > { %v2710_v15 = vpop.f32.mrf.mxu0 }
 0xa20   : > { %v1786_v16 = vadd.f32 %v2554_v13, %v1778_v14 }
 0xa21   : > { %v1775_v17 = vpop.f32.mrf.mxu0 }
 0xa22   : > { %v1787_v18 = vadd.f32 %v1786_v16, %v3434_v5  ;;  %v2862_v5 = vld [vmem:[%s3401_s26 + $0x18] sm:$0xff]   ;;  %v2064_v17 = vld [vmem:[#allocation3] sm:$0xf] }
 0xa23   : > { %v2711_v19 = vpop.f32.mrf.mxu0  ;;  %2721 = vmatpush3.bf16.msra.mxu0 %v2862_v5 }
 0xa24   : > { %v1790_v20 = vsel %vm1095_vm2, %v1787_v18, 0.0  ;;  %2722 = vmatprep.subr.bf16.mxu0 %v3093_v3  ;;  %v2868_v19 = vld [vmem:[%s818_s19 + $0x8] sm:$0xff]  }
 0xa25   : > { %1791 = vadd.xlane.f32.xlu1 %v1790_v20  ;;  %v2869_v20 = vld [vmem:[%s818_s19] sm:$0xff]  }
 0xa27   : > { %2723 = vmatpush3.bf16.msra.mxu0 %v2863_v28 }
 0xa28   : > { %2724 = vmatprep.subr.bf16.mxu0 %v3093_v3 }
 0xa2b   : > { %2725 = vmatpush3.bf16.msra.mxu0 %v2864_v39 }
 0xa2c   : > { %2726 = vmatprep.subr.bf16.mxu0 %v3093_v3 }
 0xa2f   : > { %2727 = vmatpush3.bf16.msra.mxu0 %v2865_v40 }
 0xa30   : > { %2746 = vmatprep.subr.bf16.mxu0 %v3093_v3 }
 0xaae   : > { %v1792_v21 = vpop.xlane.xlu1 %1791 }
 0xaaf   : > { %v1794_v22 = vmul.f32 0.03125, %v1792_v21  ;;  %v2573_v21 = vld [vmem:[%s1052_s2] ss:$0 sm:$0xff] }
 0xab1   : > { %v1795_v23 = vsub.f32 %v1787_v18, %v1794_v22 }
 0xab3   : > { %v1796_v24 = vmul.f32 %v1795_v23, %v1795_v23 }
 0xab5   : > { %v1797_v25 = vsel %vm1095_vm2, %v1796_v24, 0.0 }
 0xab6   : > { %1798 = vadd.xlane.f32.xlu1 %v1797_v25 }
 0xb3f   : > { %v1799_v29 = vpop.xlane.xlu1 %1798 }
 0xb40   : > { %v1800_v30 = vmul.f32 0.03125, %v1799_v29 }
 0xb42   : > { %v1801_v31 = vadd.f32 1e-05, %v1800_v30 }
 0xb44   : > { %2886 = vrsqrt.f32 %v1801_v31 }
 0xb51   : > { %v2887_v32 = vpop.eup %2886 }
 0xb52   : > { %v1803_v34 = vmul.f32 %v2887_v32, %v1795_v23  ;;  %v2574_v23 = vld [vmem:[%s1055_s27] ss:$0 sm:$0xff] }
 0xb54   : > { %v1810_v36 = vmul.f32 %v2555_v33, %v1803_v34 }
 0xb56   : > { %v1817_v37 = vadd.f32 %v2556_v35, %v1810_v36  ;;  %v2142_v36 = vld [vmem:[%s1058_s13] sm:$0x1] }
 0xb58   : > { %v1818_v38 = vpack.c.bf16 %v1817_v37, %v1817_v37 }
 0xb5a   : > { %2717 = vmatmul.mubr.msk.bf16.vlgmr.msra.gmra.mxu1 %vm1095_vm2, %v1818_v38  ;;  %v2198_v38 = vld [vmem:[#allocation10] sm:$0x1] }
 0xb5b   : > { %2736 = vmatprep.mubr.msk.bf16.mxu1 %vm3094_vm1, %v3093_v3  ;;  %2733 = vmatpush3.bf16.msra.mxu1 %v2866_v61 }
 0xb5c   : > { %2734 = vmatprep.subr.bf16.mxu1 %v3093_v3 }
 0xb5f   : > { %2735 = vmatpush3.bf16.msra.mxu1 %v2867_v62 }
 0xb60   : > { %2740 = vmatprep.subr.bf16.mxu1 %v3093_v3 }
 0xc1a   : > { %v1879_v42 = vpop.f32.mrf.mxu1 }
 0xc1b   : > { %v1880_v43 = vadd.f32 %v2557_v41, %v1879_v42 }
 0xc1c   : > { %v2718_v44 = vpop.f32.mrf.mxu1 }
 0xc1d   : > { %v1885_v45 = vmax.f32 %v1880_v43, 0.0 }
 0xc1e   : > { %v1882_v46 = vpop.f32.mrf.mxu1 }
 0xc1f   : > { %v1886_v47 = vpack.c.bf16 %v1885_v45, %v1885_v45 }
 0xc20   : > { %v2719_v48 = vpop.f32.mrf.mxu1 }
 0xc21   : > { %2729 = vmatmul.mubr.msk.bf16.vlgmr.msra.gmra.mxu0 %vm1926_vm5, %v1886_v47 }
 0xc22   : > { %2750 = vmatprep.mubr.msk.bf16.mxu0 %vm3094_vm1, %v3093_v3  ;;  %2747 = vmatpush3.bf16.msra.mxu0 %v2868_v19 }
 0xc23   : > { %2748 = vmatprep.subr.bf16.mxu0 %v3093_v3 }
 0xc26   : > { %2749 = vmatpush3.bf16.msra.mxu0 %v2869_v20 }
 0xce1   : > { %v1964_v50 = vpop.f32.mrf.mxu0 }
 0xce2   : > { %v1965_v51 = vadd.f32 %v2561_v49, %v1964_v50 }
 0xce3   : > { %v2730_v52 = vpop.f32.mrf.mxu0 }
 0xce4   : > { %v1970_v53 = vadd.f32 %v1965_v51, %v1817_v37 }
 0xce5   : > { %v1967_v54 = vpop.f32.mrf.mxu0 }
 0xce6   : > { %v1973_v55 = vsel %vm1095_vm2, %v1970_v53, 0.0 }
 0xce7   : > { %1974 = vadd.xlane.f32.xlu1 %v1973_v55  ;;  %v2731_v56 = vpop.f32.mrf.mxu0 }
 0xd70   : > { %v1975_v57 = vpop.xlane.xlu1 %1974 }
 0xd71   : > { %v1976_v58 = vmul.f32 0.03125, %v1975_v57 }
 0xd73   : > { %v1977_v59 = vsub.f32 %v1970_v53, %v1976_v58 }
 0xd75   : > { %v1978_v60 = vmul.f32 %v1977_v59, %v1977_v59 }
 0xd77   : > { %v1979_v11 = vsel %vm1095_vm2, %v1978_v60, 0.0 }
 0xd78   : > { %1980 = vadd.xlane.f32.xlu1 %v1979_v11 }
 0xe01   : > { %v1981_v63 = vpop.xlane.xlu1 %1980 }
 0xe02   : > { %v1982_v0 = vmul.f32 0.03125, %v1981_v63 }
 0xe04   : > { %v1983_v1 = vadd.f32 1e-05, %v1982_v0 }
 0xe06   : > { %2888 = vrsqrt.f32 %v1983_v1 }
 0xe13   : > { %v2889_v2 = vpop.eup %2888 }
 0xe14   : > { %v1985_v6 = vmul.f32 %v2889_v2, %v1977_v59 }
 0xe16   : > { %v1992_v8 = vmul.f32 %v2567_v4, %v1985_v6 }
 0xe18   : > { %v1999_v9 = vadd.f32 %v2568_v7, %v1992_v8 }
 0xe1a   : > { %v2004_v10 = vpack.c.bf16 %v1999_v9, %v1999_v9  ;;  %2000 = vst.msk [vmem:[#allocation2] sm:$0xff] %vm1095_vm2, %v1999_v9 }
 0xe1c   : > { %2737 = vmatmul.mubr.msk.bf16.vlgmr.msra.gmra.mxu1 %vm1095_vm2, %v2004_v10 }
 0xe1d   : > { %2742 = vmatprep.mubr.msk.bf16.mxu1 %vm3094_vm1, %v3093_v3 }
 0xedc   : > { %v2058_v12 = vpop.f32.mrf.mxu1 }
 0xedd   : > { %v2065_v13 = vpack.c.bf16 %v2058_v12, %v2058_v12 }
 0xede   : > { %v2738_v14 = vpop.f32.mrf.mxu1 }
 0xedf   : > { %v2070_v15 = vsel %vm1212_vm4, %v2065_v13, 0 }
 0xee0   : > { %v2061_v16 = vpop.f32.mrf.mxu1  ;;  %2741 = vmatpush3.bf16.msra.mxu1 %v2070_v15 }
 0xee2   : > { %v2739_v18 = vpop.f32.mrf.mxu1 }
 0xee3   : > { %2743 = vmatmul.mubr.msk.bf16.vlgmr.msra.gmra.mxu1 %vm1147_vm3, %v2064_v17 }
 0xfa3   : > { %v2106_v22 = vpop.f32.mrf.mxu1 }
 0xfa4   : > { %v2119_v24 = vmul.f32 %v2573_v21, %v2106_v22 }
 0xfa5   : > { %v2744_v25 = vpop.f32.mrf.mxu1 }
 0xfa6   : > { %v2127_v26 = vadd.f32 %v2574_v23, %v2119_v24 }
 0xfa7   : > { %v2109_v27 = vpop.f32.mrf.mxu1 }
 0xfa8   : > { %v2128_v3 = vmax.f32 %v2127_v26, 0.0 }
 0xfa9   : > { %v2745_v5 = vpop.f32.mrf.mxu1 }
 0xfaa   : > { %2129 = vst.msk [vmem:[#allocation2] sm:$0xff] %vm1095_vm2, %v2128_v3  ;;  %v2130_v28 = vsel %vm1095_vm2, %v2128_v3, 0.0 }
 0xfab   : > { %v2131_v29 = vrot.slane %v2130_v28, 4 }
 0xfad   : > { %v2132_v30 = vadd.f32 %v2131_v29, %v2130_v28 }
 0xfaf   : > { %v2133_v31 = vrot.slane %v2132_v30, 2 }
 0xfb1   : > { %v2134_v32 = vadd.f32 %v2133_v31, %v2132_v30 }
 0xfb3   : > { %v2135_v33 = vrot.slane %v2134_v32, 1 }
 0xfb5   : > { %v2136_v34 = vadd.f32 %v2135_v33, %v2134_v32 }
 0xfb7   : > { %v2137_v35 = vpack.c.bf16 %v2136_v34, %v2136_v34 }
 0xfb9   : > { %2751 = vmatmul.mubr.msk.bf16.vlgmr.msra.gmra.mxu0 %vm1095_vm2, %v2137_v35 }
0x1079   : > { %v2192_v37 = vpop.f32.mrf.mxu0 }
0x107a   : > { %v2193_v39 = vadd.f32 %v2192_v37, %v2142_v36 }
0x107b   : > { %v2752_v40 = vpop.f32.mrf.mxu0 }
0x107c   : > { %v2199_v41 = vadd.f32 %v2198_v38, %v2193_v39 }
0x107d   : > { %v2195_v42 = vpop.f32.mrf.mxu0 }
0x107e   : > { %2200 = vst [vmem:[#allocation10] sm:$0x1] %v2199_v41 }
0x107f   : > { %v2753_v43 = vpop.f32.mrf.mxu0 }
0x1080   : > { %3011 = shalt.err (!%p3008_p5)
}
0x1081   : > { %s3761_s15 = sld [smem:[#allocation39_spill]] }
0x1087   : > { %2767 = dma.vmem_to_hbm [thread:$0]  (%p2789_p6), %s2209_s21, 16, %s3761_s15, [#allocation5]  }
0x1088   : > { %3059 = dma.done.wait (%p2789_p6), [#allocation5], 16  }
0x1089   : > { %3061 = vsyncadd (%p2789_p6), [#allocation5], 4294967280 }
0x108a PF: > { %s3762_s24 = sld [smem:[#allocation18_spill]] }
0x108b   : > { %s3763_s0 = sld [smem:[#allocation15_spill]] }
0x108c   : > { %s3764_s30 = sld [smem:[#allocation16_spill]] }
0x108d   : > { %s3765_s20 = sld [smem:[#allocation21_spill]] }
0x108e   : > { %s3766_s21 = sld [smem:[#allocation17_spill]] }
0x108f   : > { %s3767_s1 = sld [smem:[#allocation20_spill]] }
0x1090   : > { %s32_s22 = sadd.s32 1, %s3762_s24  }
0x1091   : > { %p29_p11 = scmp.ge.s32.totalorder %s32_s22, 4  }
0x1093   :  { %31 = sbr.rel (!%p29_p11) target bundleno = 24 (0x18), region = 204 }
0x1098   :  { %2221 = vsyncpa [#allocation4], 1 }
0x1099   :  { %2223 = vsyncpa [#allocation4 + $0x1], 1 }
0x109a   :  { %2224 = vsyncpa [#allocation7], 1 }
0x109b   :  { %2225 = vsyncpa [#allocation5], 1 }
0x109c   :  { %2227 = vsyncpa [#allocation5 + $0x1], 1 }

</bundles_post_ra>
